<compile_context>
chip_gen: v7x
topology: tpu7x:2x2x1
jax: 0.10.0
libtpu: 0.0.40
codegen_flags: <defaults>
</compile_context>

<pallas_src>
from functools import partial

import jax
import jax.numpy as jnp
from jax.experimental import pallas as pl
from jax.experimental.pallas import tpu as pltpu


def _bsconv_kernel(x_ref, xt_ref, xb_ref, w1_ref, b1_ref, dw_ref, b2_ref,
                   o_ref, y_ref, *, KH, KW, PH, PW, multi_tile):
    # x_ref : (1, TH, W, Cin)   core rows of this tile
    # xt_ref: (1, PH, W, Cin)   PH rows just above the tile (clamped at t == 0)
    # xb_ref: (1, PH, W, Cin)   PH rows just below the tile (clamped at t == T-1)
    # w1_ref: (Cin, Cp)   b1_ref: (1, Cp)
    # dw_ref: (KH*KW, Cp) depthwise taps (row = kh*KW + kw)   b2_ref: (1, Cp)
    # o_ref : (1, TH, W, Cp)
    # y_ref : VMEM scratch (TH + 2*PH, W, Cp) f32: pointwise output + H halo
    t = pl.program_id(1)
    n_t = pl.num_programs(1)
    _, TH, W, Cin = x_ref.shape
    Cp = o_ref.shape[3]

    w1 = w1_ref[...]                       # (Cin, Cp)
    b1 = b1_ref[...]                       # (1, Cp)

    # ---- pointwise 1x1 conv: matmul over channels (MXU) ----
    # TODO(synk): optional bf16 cast for the matmul on v6e/v7x (f32 accum) and
    # a VPU broadcast-FMA path for tiny Cin, when the accuracy budget allows.
    yc = jnp.dot(x_ref[0].reshape(TH * W, Cin), w1,
                 preferred_element_type=jnp.float32) + b1
    y_ref[PH:PH + TH, :, :] = yc.reshape(TH, W, Cp)

    if PH > 0:
        if multi_tile:
            # Interior tiles: compute the halo pointwise rows unconditionally;
            # boundary tiles overwrite the out-of-image rows with zeros via
            # pl.when (cheaper than a per-element select on every tile).
            yt = jnp.dot(xt_ref[0].reshape(PH * W, Cin), w1,
                         preferred_element_type=jnp.float32) + b1
            y_ref[0:PH, :, :] = yt.reshape(PH, W, Cp)

            yb = jnp.dot(xb_ref[0].reshape(PH * W, Cin), w1,
                         preferred_element_type=jnp.float32) + b1
            y_ref[PH + TH:, :, :] = yb.reshape(PH, W, Cp)

            @pl.when(t == 0)
            def _():
                y_ref[0:PH, :, :] = jnp.zeros((PH, W, Cp), jnp.float32)

            @pl.when(t == n_t - 1)
            def _():
                y_ref[PH + TH:, :, :] = jnp.zeros((PH, W, Cp), jnp.float32)
        else:
            # Single row tile: both halos are outside the image -> plain zero.
            y_ref[0:PH, :, :] = jnp.zeros((PH, W, Cp), jnp.float32)
            y_ref[PH + TH:, :, :] = jnp.zeros((PH, W, Cp), jnp.float32)

    # ---- depthwise KHxKW conv: VPU FMAs + XLU rolls for the W taps ----
    col = (jax.lax.broadcasted_iota(jnp.int32, (TH, W, Cp), 1)
           if KW > 1 else None)
    acc = None
    for kw in range(KW):
        d = kw - PW                        # W offset of this tap column
        inner = None
        for kh in range(KH):
            tap = dw_ref[kh * KW + kw]     # (Cp,) per-channel tap
            term = y_ref[kh:kh + TH, :, :] * tap
            inner = term if inner is None else inner + term
        if d > 0:
            inner = pltpu.roll(inner, shift=W - d, axis=1)
            inner = jnp.where(col < W - d, inner, 0.0)
        elif d < 0:
            inner = pltpu.roll(inner, shift=-d, axis=1)
            inner = jnp.where(col >= -d, inner, 0.0)
        acc = inner if acc is None else acc + inner

    acc = acc + b2_ref[...]                # (1, Cp) bias broadcast
    o_ref[0] = acc.astype(o_ref.dtype)


def bsconv2d_nhwc(x_nhwc, w1, b1, dw, b2, kernel_size=(3, 3), th_max=None):
    """NHWC-native BSConv2d.

    x_nhwc: (N, H, W, Cin).  w1: (Cin, Cout) pointwise weight, b1: (Cout,),
    dw: (Cout, 1, KH, KW) depthwise weight (PyTorch layout), b2: (Cout,).
    Returns (N, H, W, Cout).
    """
    N, H, W, Cin = x_nhwc.shape
    Cout = w1.shape[1]
    KH, KW = kernel_size
    assert KH % 2 == 1 and KW % 2 == 1, "only odd kernel sizes supported"
    PH, PW = KH // 2, KW // 2              # == (dilation*(k-1)+1)//2, dilation=1
    if PH > 0:
        assert H % PH == 0, "H must be a multiple of the row halo PH"

    # Lane-dense channels: pad Cout up to a multiple of 128, slice off after.
    Cp = ((Cout + 127) // 128) * 128
    f32 = jnp.float32
    w1_p = jnp.zeros((Cin, Cp), f32).at[:, :Cout].set(w1.astype(f32))
    b1_p = jnp.zeros((1, Cp), f32).at[0, :Cout].set(b1.astype(f32))
    dw_p = jnp.zeros((KH * KW, Cp), f32).at[:, :Cout].set(
        dw.reshape(Cout, KH * KW).T.astype(f32))
    b2_p = jnp.zeros((1, Cp), f32).at[0, :Cout].set(b2.astype(f32))

    halo = max(PH, 1)

    def vmem_est(th):                      # double-buffered ins/outs + scratch
        ins = 2 * 4 * (th * W * Cin + 2 * halo * W * Cin
                       + Cin * Cp + 2 * Cp + KH * KW * Cp)
        outs = 2 * 4 * th * W * Cp
        scratch = 4 * (th + 2 * PH) * W * Cp
        return ins + outs + scratch

    bound = H if th_max is None else max(1, min(H, th_max))
    cands = [c for c in range(1, bound + 1)
             if H % c == 0 and (PH == 0 or c % PH == 0)]
    assert cands, "no valid row-tile size"
    TH = cands[0]
    budget = 24 * 1024 * 1024
    for c in reversed(cands):              # biggest tile that fits the budget
        if vmem_est(c) <= budget:
            TH = c
            break
    T = H // TH
    multi_tile = T > 1

    x_core = pl.BlockSpec((1, TH, W, Cin), lambda n, t: (n, t, 0, 0))
    if multi_tile and PH > 0:
        THB = TH // PH
        HB = H // PH
        x_top = pl.BlockSpec(
            (1, PH, W, Cin),
            lambda n, t: (n, jnp.maximum(t * THB - 1, 0), 0, 0))
        x_bot = pl.BlockSpec(
            (1, PH, W, Cin),
            lambda n, t: (n, jnp.minimum((t + 1) * THB, HB - 1), 0, 0))
    else:                                  # unused halo views: minimal DMA
        x_top = pl.BlockSpec((1, 1, W, Cin), lambda n, t: (n, 0, 0, 0))
        x_bot = pl.BlockSpec((1, 1, W, Cin), lambda n, t: (n, 0, 0, 0))

    kernel = partial(_bsconv_kernel, KH=KH, KW=KW, PH=PH, PW=PW,
                     multi_tile=multi_tile)

    # Keep double-buffering intact but stay well inside v7x's 64 MiB VMEM.
    vmem_limit = int(min(56 * 1024 * 1024,
                         max(32 * 1024 * 1024, 1.5 * vmem_est(TH))))

    out = pl.pallas_call(
        kernel,
        out_shape=jax.ShapeDtypeStruct((N, H, W, Cp), x_nhwc.dtype),
        grid_spec=pltpu.PrefetchScalarGridSpec(
            num_scalar_prefetch=0,
            grid=(N, T),
            in_specs=[
                x_core, x_top, x_bot,
                pl.BlockSpec((Cin, Cp), lambda n, t: (0, 0)),
                pl.BlockSpec((1, Cp), lambda n, t: (0, 0)),
                pl.BlockSpec((KH * KW, Cp), lambda n, t: (0, 0)),
                pl.BlockSpec((1, Cp), lambda n, t: (0, 0)),
            ],
            out_specs=pl.BlockSpec((1, TH, W, Cp), lambda n, t: (n, t, 0, 0)),
            scratch_shapes=[pltpu.VMEM((TH + 2 * PH, W, Cp), jnp.float32)],
        ),
        compiler_params=pltpu.CompilerParams(
            dimension_semantics=("parallel", "parallel"),
            vmem_limit_bytes=vmem_limit),
    )(x_nhwc, x_nhwc, x_nhwc, w1_p, b1_p, dw_p, b2_p)

    return out[..., :Cout] if Cout != Cp else out


def bsconv2d(x_nchw, w1, b1, dw, b2, kernel_size=(3, 3), th_max=None):
    """PyTorch-layout wrapper: x (N, Cin, H, W) -> (N, Cout, H, W).

    NOTE: the NCHW<->NHWC transposes here are boundary plumbing for the
    PyTorch layout only; NHWC pipelines should call bsconv2d_nhwc directly to
    avoid the extra HBM round trips (this op is memory-bound).
    """
    x = jnp.transpose(x_nchw, (0, 2, 3, 1))                 # NCHW -> NHWC
    out = bsconv2d_nhwc(x, w1, b1, dw, b2, kernel_size=kernel_size,
                        th_max=th_max)
    return jnp.transpose(out, (0, 3, 1, 2))                 # NHWC -> NCHW


def bsconv2d_reference(x_nchw, w1, b1, dw, b2, kernel_size=(3, 3)):
    """Pure-JAX reference (lax convs) mirroring the PyTorch module."""
    Cin, Cout = w1.shape
    KH, KW = kernel_size
    PH = ((KH - 1) + 1) // 2
    PW = ((KW - 1) + 1) // 2
    w1_oihw = w1.T.reshape(Cout, Cin, 1, 1)
    y = jax.lax.conv_general_dilated(
        x_nchw, w1_oihw, window_strides=(1, 1), padding="VALID",
        dimension_numbers=("NCHW", "OIHW", "NCHW"))
    y = y + b1.reshape(1, Cout, 1, 1)
    z = jax.lax.conv_general_dilated(
        y, dw, window_strides=(1, 1), padding=((PH, PH), (PW, PW)),
        feature_group_count=Cout,
        dimension_numbers=("NCHW", "OIHW", "NCHW"))
    z = z + b2.reshape(1, Cout, 1, 1)
    return z


if __name__ == "__main__":
    key = jax.random.PRNGKey(0)
    k_x, k_w1, k_b1, k_b2, k_dw = jax.random.split(key, 5)

    N, Cin, H, W = 2, 4, 16, 16
    Cout = 8

    x = jax.random.normal(k_x, (N, Cin, H, W), dtype=jnp.float32)
    w1 = jax.random.normal(k_w1, (Cin, Cout), dtype=jnp.float32) * 0.2
    b1 = jax.random.normal(k_b1, (Cout,), dtype=jnp.float32) * 0.1
    b2 = jax.random.normal(k_b2, (Cout,), dtype=jnp.float32) * 0.1

    # Cases: single row-tile (specialized path), multi-tile (exercises the
    # halo + pl.when boundary path), and a 5x5 kernel (PH = PW = 2) split
    # into two row tiles.
    cases = (((3, 3), None), ((3, 3), 4), ((5, 5), 8))
    for i, (ks, th_max) in enumerate(cases):
        KH, KW = ks
        dw = jax.random.normal(jax.random.fold_in(k_dw, i),
                               (Cout, 1, KH, KW), dtype=jnp.float32) * 0.2

        out = bsconv2d(x, w1, b1, dw, b2, kernel_size=ks, th_max=th_max)
        out = jax.block_until_ready(out)

        ref = bsconv2d_reference(x, w1, b1, dw, b2, kernel_size=ks)
        ref = jax.block_until_ready(ref)

        assert out.shape == (N, Cout, H, W), out.shape
        err = float(jnp.max(jnp.abs(out - ref)))
        assert jnp.allclose(out, ref, atol=1e-4, rtol=1e-4), (ks, th_max, err)

    print("KERNEL_OK")
</pallas_src>

<mosaic_0001>
module attributes {stable_mosaic.version = 11 : i64} {
  func.func @_bsconv_kernel(%arg0: i32, %arg1: i32, %arg2: memref<1x16x16x4xf32, #tpu.memory_space<vmem>>, %arg3: memref<1x1x16x4xf32, #tpu.memory_space<vmem>>, %arg4: memref<1x1x16x4xf32, #tpu.memory_space<vmem>>, %arg5: memref<4x128xf32, #tpu.memory_space<vmem>>, %arg6: memref<1x128xf32, #tpu.memory_space<vmem>>, %arg7: memref<9x128xf32, #tpu.memory_space<vmem>>, %arg8: memref<1x128xf32, #tpu.memory_space<vmem>>, %arg9: memref<1x16x16x128xf32, #tpu.memory_space<vmem>>, %arg10: memref<18x16x128xf32, #tpu.memory_space<vmem>>) attributes {dimension_semantics = [#tpu.dimension_semantics<parallel>, #tpu.dimension_semantics<parallel>], iteration_bounds = array<i64: 2, 1>, scalar_prefetch = 0 : i64, scratch_operands = 1 : i64, tpu.core_type = #tpu.core_type<tc>, window_params = [{transform_indices = @transform_0, window_bounds = array<i64: 1, 16, 16, 4>}, {transform_indices = @transform_1, window_bounds = array<i64: 1, 1, 16, 4>}, {transform_indices = @transform_2, window_bounds = array<i64: 1, 1, 16, 4>}, {pipeline_mode = #tpu.pipeline_mode<synchronous>, transform_indices = @transform_3, window_bounds = array<i64: 4, 128>}, {pipeline_mode = #tpu.pipeline_mode<synchronous>, transform_indices = @transform_4, window_bounds = array<i64: 1, 128>}, {pipeline_mode = #tpu.pipeline_mode<synchronous>, transform_indices = @transform_5, window_bounds = array<i64: 9, 128>}, {pipeline_mode = #tpu.pipeline_mode<synchronous>, transform_indices = @transform_6, window_bounds = array<i64: 1, 128>}, {transform_indices = @transform_7, window_bounds = array<i64: 1, 16, 16, 128>}]} {
    %c0 = arith.constant 0 : index
    %c0_0 = arith.constant 0 : index
    %0 = vector.load %arg5[%c0, %c0_0] : memref<4x128xf32, #tpu.memory_space<vmem>>, vector<4x128xf32>
    %c0_1 = arith.constant 0 : index
    %c0_2 = arith.constant 0 : index
    %1 = vector.load %arg6[%c0_1, %c0_2] : memref<1x128xf32, #tpu.memory_space<vmem>>, vector<1x128xf32>
    %c0_3 = arith.constant 0 : index
    %c0_4 = arith.constant 0 : index
    %c0_5 = arith.constant 0 : index
    %c0_6 = arith.constant 0 : index
    %2 = vector.load %arg2[%c0_3, %c0_4, %c0_5, %c0_6] : memref<1x16x16x4xf32, #tpu.memory_space<vmem>>, vector<1x16x16x4xf32>
    %3 = vector.shape_cast %2 : vector<1x16x16x4xf32> to vector<16x16x4xf32>
    %4 = vector.shape_cast %3 : vector<16x16x4xf32> to vector<256x4xf32>
    %cst = arith.constant dense<0.000000e+00> : vector<256x128xf32>
    %5 = tpu.matmul %4, %0, %cst {dimension_numbers = #tpu.dot_dimension_numbers<[1], [0], [0], [1], [0, 0, 1, 1], [], []>} : vector<256x4xf32>, vector<4x128xf32>, vector<256x128xf32> -> vector<256x128xf32>
    %6 = vector.broadcast %1 : vector<1x128xf32> to vector<256x128xf32>
    %7 = arith.addf %5, %6 : vector<256x128xf32>
    %8 = vector.shape_cast %7 : vector<256x128xf32> to vector<16x16x128xf32>
    %c1 = arith.constant 1 : index
    %c0_7 = arith.constant 0 : index
    %c0_8 = arith.constant 0 : index
    %9 = vector.load %arg10[%c1, %c0_7, %c0_8] : memref<18x16x128xf32, #tpu.memory_space<vmem>>, vector<16x16x128xf32>
    tpu.vector_store %arg10[%c1, %c0_7, %c0_8], %8 {strides = array<i32>} : memref<18x16x128xf32, #tpu.memory_space<vmem>>, vector<16x16x128xf32>,
    %cst_9 = arith.constant 0.000000e+00 : f32
    %10 = vector.broadcast %cst_9 : f32 to vector<1x16x128xf32>
    %c0_10 = arith.constant 0 : index
    %c0_11 = arith.constant 0 : index
    %c0_12 = arith.constant 0 : index
    %11 = vector.load %arg10[%c0_10, %c0_11, %c0_12] : memref<18x16x128xf32, #tpu.memory_space<vmem>>, vector<1x16x128xf32>
    tpu.vector_store %arg10[%c0_10, %c0_11, %c0_12], %10 {strides = array<i32>} : memref<18x16x128xf32, #tpu.memory_space<vmem>>, vector<1x16x128xf32>,
    %cst_13 = arith.constant 0.000000e+00 : f32
    %12 = vector.broadcast %cst_13 : f32 to vector<1x16x128xf32>
    %c17 = arith.constant 17 : index
    %c0_14 = arith.constant 0 : index
    %c0_15 = arith.constant 0 : index
    %13 = vector.load %arg10[%c17, %c0_14, %c0_15] : memref<18x16x128xf32, #tpu.memory_space<vmem>>, vector<1x16x128xf32>
    tpu.vector_store %arg10[%c17, %c0_14, %c0_15], %12 {strides = array<i32>} : memref<18x16x128xf32, #tpu.memory_space<vmem>>, vector<1x16x128xf32>,
    %14 = tpu.iota {dimensions = array<i32: 1>} : vector<16x16x128xi32>
    %c0_16 = arith.constant 0 : index
    %c0_17 = arith.constant 0 : index
    %15 = vector.load %arg7[%c0_16, %c0_17] : memref<9x128xf32, #tpu.memory_space<vmem>>, vector<1x128xf32>
    %16 = vector.shape_cast %15 : vector<1x128xf32> to vector<128xf32>
    %c0_18 = arith.constant 0 : index
    %c0_19 = arith.constant 0 : index
    %c0_20 = arith.constant 0 : index
    %17 = vector.load %arg10[%c0_18, %c0_19, %c0_20] : memref<18x16x128xf32, #tpu.memory_space<vmem>>, vector<16x16x128xf32>
    %18 = vector.shape_cast %16 : vector<128xf32> to vector<1x1x128xf32>
    %19 = vector.broadcast %18 : vector<1x1x128xf32> to vector<16x16x128xf32>
    %20 = arith.mulf %17, %19 : vector<16x16x128xf32>
    %c3 = arith.constant 3 : index
    %c0_21 = arith.constant 0 : index
    %21 = vector.load %arg7[%c3, %c0_21] : memref<9x128xf32, #tpu.memory_space<vmem>>, vector<1x128xf32>
    %22 = vector.shape_cast %21 : vector<1x128xf32> to vector<128xf32>
    %c1_22 = arith.constant 1 : index
    %c0_23 = arith.constant 0 : index
    %c0_24 = arith.constant 0 : index
    %23 = vector.load %arg10[%c1_22, %c0_23, %c0_24] : memref<18x16x128xf32, #tpu.memory_space<vmem>>, vector<16x16x128xf32>
    %24 = vector.shape_cast %22 : vector<128xf32> to vector<1x1x128xf32>
    %25 = vector.broadcast %24 : vector<1x1x128xf32> to vector<16x16x128xf32>
    %26 = arith.mulf %23, %25 : vector<16x16x128xf32>
    %27 = arith.addf %20, %26 : vector<16x16x128xf32>
    %c6 = arith.constant 6 : index
    %c0_25 = arith.constant 0 : index
    %28 = vector.load %arg7[%c6, %c0_25] : memref<9x128xf32, #tpu.memory_space<vmem>>, vector<1x128xf32>
    %29 = vector.shape_cast %28 : vector<1x128xf32> to vector<128xf32>
    %c2 = arith.constant 2 : index
    %c0_26 = arith.constant 0 : index
    %c0_27 = arith.constant 0 : index
    %30 = vector.load %arg10[%c2, %c0_26, %c0_27] : memref<18x16x128xf32, #tpu.memory_space<vmem>>, vector<16x16x128xf32>
    %31 = vector.shape_cast %29 : vector<128xf32> to vector<1x1x128xf32>
    %32 = vector.broadcast %31 : vector<1x1x128xf32> to vector<16x16x128xf32>
    %33 = arith.mulf %30, %32 : vector<16x16x128xf32>
    %34 = arith.addf %27, %33 : vector<16x16x128xf32>
    %c1_i32 = arith.constant 1 : i32
    %35 = tpu.dynamic_rotate %34 by %c1_i32 dim 1 : vector<16x16x128xf32>, i32 -> vector<16x16x128xf32>
    %c1_i32_28 = arith.constant 1 : i32
    %36 = vector.broadcast %c1_i32_28 : i32 to vector<16x16x128xi32>
    %37 = arith.cmpi sge, %14, %36 : vector<16x16x128xi32>
    %cst_29 = arith.constant 0.000000e+00 : f32
    %38 = vector.broadcast %cst_29 : f32 to vector<16x16x128xf32>
    %39 = arith.select %37, %35, %38 : vector<16x16x128xi1>, vector<16x16x128xf32>
    %c1_30 = arith.constant 1 : index
    %c0_31 = arith.constant 0 : index
    %40 = vector.load %arg7[%c1_30, %c0_31] : memref<9x128xf32, #tpu.memory_space<vmem>>, vector<1x128xf32>
    %41 = vector.shape_cast %40 : vector<1x128xf32> to vector<128xf32>
    %c0_32 = arith.constant 0 : index
    %c0_33 = arith.constant 0 : index
    %c0_34 = arith.constant 0 : index
    %42 = vector.load %arg10[%c0_32, %c0_33, %c0_34] : memref<18x16x128xf32, #tpu.memory_space<vmem>>, vector<16x16x128xf32>
    %43 = vector.shape_cast %41 : vector<128xf32> to vector<1x1x128xf32>
    %44 = vector.broadcast %43 : vector<1x1x128xf32> to vector<16x16x128xf32>
    %45 = arith.mulf %42, %44 : vector<16x16x128xf32>
    %c4 = arith.constant 4 : index
    %c0_35 = arith.constant 0 : index
    %46 = vector.load %arg7[%c4, %c0_35] : memref<9x128xf32, #tpu.memory_space<vmem>>, vector<1x128xf32>
    %47 = vector.shape_cast %46 : vector<1x128xf32> to vector<128xf32>
    %c1_36 = arith.constant 1 : index
    %c0_37 = arith.constant 0 : index
    %c0_38 = arith.constant 0 : index
    %48 = vector.load %arg10[%c1_36, %c0_37, %c0_38] : memref<18x16x128xf32, #tpu.memory_space<vmem>>, vector<16x16x128xf32>
    %49 = vector.shape_cast %47 : vector<128xf32> to vector<1x1x128xf32>
    %50 = vector.broadcast %49 : vector<1x1x128xf32> to vector<16x16x128xf32>
    %51 = arith.mulf %48, %50 : vector<16x16x128xf32>
    %52 = arith.addf %45, %51 : vector<16x16x128xf32>
    %c7 = arith.constant 7 : index
    %c0_39 = arith.constant 0 : index
    %53 = vector.load %arg7[%c7, %c0_39] : memref<9x128xf32, #tpu.memory_space<vmem>>, vector<1x128xf32>
    %54 = vector.shape_cast %53 : vector<1x128xf32> to vector<128xf32>
    %c2_40 = arith.constant 2 : index
    %c0_41 = arith.constant 0 : index
    %c0_42 = arith.constant 0 : index
    %55 = vector.load %arg10[%c2_40, %c0_41, %c0_42] : memref<18x16x128xf32, #tpu.memory_space<vmem>>, vector<16x16x128xf32>
    %56 = vector.shape_cast %54 : vector<128xf32> to vector<1x1x128xf32>
    %57 = vector.broadcast %56 : vector<1x1x128xf32> to vector<16x16x128xf32>
    %58 = arith.mulf %55, %57 : vector<16x16x128xf32>
    %59 = arith.addf %52, %58 : vector<16x16x128xf32>
    %60 = arith.addf %39, %59 : vector<16x16x128xf32>
    %c2_43 = arith.constant 2 : index
    %c0_44 = arith.constant 0 : index
    %61 = vector.load %arg7[%c2_43, %c0_44] : memref<9x128xf32, #tpu.memory_space<vmem>>, vector<1x128xf32>
    %62 = vector.shape_cast %61 : vector<1x128xf32> to vector<128xf32>
    %c0_45 = arith.constant 0 : index
    %c0_46 = arith.constant 0 : index
    %c0_47 = arith.constant 0 : index
    %63 = vector.load %arg10[%c0_45, %c0_46, %c0_47] : memref<18x16x128xf32, #tpu.memory_space<vmem>>, vector<16x16x128xf32>
    %64 = vector.shape_cast %62 : vector<128xf32> to vector<1x1x128xf32>
    %65 = vector.broadcast %64 : vector<1x1x128xf32> to vector<16x16x128xf32>
    %66 = arith.mulf %63, %65 : vector<16x16x128xf32>
    %c5 = arith.constant 5 : index
    %c0_48 = arith.constant 0 : index
    %67 = vector.load %arg7[%c5, %c0_48] : memref<9x128xf32, #tpu.memory_space<vmem>>, vector<1x128xf32>
    %68 = vector.shape_cast %67 : vector<1x128xf32> to vector<128xf32>
    %c1_49 = arith.constant 1 : index
    %c0_50 = arith.constant 0 : index
    %c0_51 = arith.constant 0 : index
    %69 = vector.load %arg10[%c1_49, %c0_50, %c0_51] : memref<18x16x128xf32, #tpu.memory_space<vmem>>, vector<16x16x128xf32>
    %70 = vector.shape_cast %68 : vector<128xf32> to vector<1x1x128xf32>
    %71 = vector.broadcast %70 : vector<1x1x128xf32> to vector<16x16x128xf32>
    %72 = arith.mulf %69, %71 : vector<16x16x128xf32>
    %73 = arith.addf %66, %72 : vector<16x16x128xf32>
    %c8 = arith.constant 8 : index
    %c0_52 = arith.constant 0 : index
    %74 = vector.load %arg7[%c8, %c0_52] : memref<9x128xf32, #tpu.memory_space<vmem>>, vector<1x128xf32>
    %75 = vector.shape_cast %74 : vector<1x128xf32> to vector<128xf32>
    %c2_53 = arith.constant 2 : index
    %c0_54 = arith.constant 0 : index
    %c0_55 = arith.constant 0 : index
    %76 = vector.load %arg10[%c2_53, %c0_54, %c0_55] : memref<18x16x128xf32, #tpu.memory_space<vmem>>, vector<16x16x128xf32>
    %77 = vector.shape_cast %75 : vector<128xf32> to vector<1x1x128xf32>
    %78 = vector.broadcast %77 : vector<1x1x128xf32> to vector<16x16x128xf32>
    %79 = arith.mulf %76, %78 : vector<16x16x128xf32>
    %80 = arith.addf %73, %79 : vector<16x16x128xf32>
    %c15_i32 = arith.constant 15 : i32
    %81 = tpu.dynamic_rotate %80 by %c15_i32 dim 1 : vector<16x16x128xf32>, i32 -> vector<16x16x128xf32>
    %c15_i32_56 = arith.constant 15 : i32
    %82 = vector.broadcast %c15_i32_56 : i32 to vector<16x16x128xi32>
    %83 = arith.cmpi slt, %14, %82 : vector<16x16x128xi32>
    %cst_57 = arith.constant 0.000000e+00 : f32
    %84 = vector.broadcast %cst_57 : f32 to vector<16x16x128xf32>
    %85 = arith.select %83, %81, %84 : vector<16x16x128xi1>, vector<16x16x128xf32>
    %86 = arith.addf %60, %85 : vector<16x16x128xf32>
    %c0_58 = arith.constant 0 : index
    %c0_59 = arith.constant 0 : index
    %87 = vector.load %arg8[%c0_58, %c0_59] : memref<1x128xf32, #tpu.memory_space<vmem>>, vector<1x128xf32>
    %88 = vector.shape_cast %87 : vector<1x128xf32> to vector<1x1x128xf32>
    %89 = vector.broadcast %88 : vector<1x1x128xf32> to vector<16x16x128xf32>
    %90 = arith.addf %86, %89 : vector<16x16x128xf32>
    %c0_60 = arith.constant 0 : index
    %c0_61 = arith.constant 0 : index
    %c0_62 = arith.constant 0 : index
    %c0_63 = arith.constant 0 : index
    %91 = vector.load %arg9[%c0_60, %c0_61, %c0_62, %c0_63] : memref<1x16x16x128xf32, #tpu.memory_space<vmem>>, vector<1x16x16x128xf32>
    %92 = vector.shape_cast %91 : vector<1x16x16x128xf32> to vector<16x16x128xf32>
    %93 = vector.shape_cast %90 : vector<16x16x128xf32> to vector<1x16x16x128xf32>
    tpu.vector_store %arg9[%c0_60, %c0_61, %c0_62, %c0_63], %93 {strides = array<i32>} : memref<1x16x16x128xf32, #tpu.memory_space<vmem>>, vector<1x16x16x128xf32>,
    return
  }
  func.func @transform_0(%arg0: i32, %arg1: i32) -> (i32, i32, i32, i32) {
    %c0_i32 = arith.constant 0 : i32
    %c0_i32_0 = arith.constant 0 : i32
    %c0_i32_1 = arith.constant 0 : i32
    return %arg0, %arg1, %c0_i32, %c0_i32_0 : i32, i32, i32, i32
  }
  func.func @transform_1(%arg0: i32, %arg1: i32) -> (i32, i32, i32, i32) {
    %c0_i32 = arith.constant 0 : i32
    %c0_i32_0 = arith.constant 0 : i32
    %c0_i32_1 = arith.constant 0 : i32
    %c0_i32_2 = arith.constant 0 : i32
    return %arg0, %c0_i32, %c0_i32_0, %c0_i32_1 : i32, i32, i32, i32
  }
  func.func @transform_2(%arg0: i32, %arg1: i32) -> (i32, i32, i32, i32) {
    %c0_i32 = arith.constant 0 : i32
    %c0_i32_0 = arith.constant 0 : i32
    %c0_i32_1 = arith.constant 0 : i32
    %c0_i32_2 = arith.constant 0 : i32
    return %arg0, %c0_i32, %c0_i32_0, %c0_i32_1 : i32, i32, i32, i32
  }
  func.func @transform_3(%arg0: i32, %arg1: i32) -> (i32, i32) {
    %c0_i32 = arith.constant 0 : i32
    %c0_i32_0 = arith.constant 0 : i32
    %c0_i32_1 = arith.constant 0 : i32
    return %c0_i32, %c0_i32_0 : i32, i32
  }
  func.func @transform_4(%arg0: i32, %arg1: i32) -> (i32, i32) {
    %c0_i32 = arith.constant 0 : i32
    %c0_i32_0 = arith.constant 0 : i32
    %c0_i32_1 = arith.constant 0 : i32
    return %c0_i32, %c0_i32_0 : i32, i32
  }
  func.func @transform_5(%arg0: i32, %arg1: i32) -> (i32, i32) {
    %c0_i32 = arith.constant 0 : i32
    %c0_i32_0 = arith.constant 0 : i32
    %c0_i32_1 = arith.constant 0 : i32
    return %c0_i32, %c0_i32_0 : i32, i32
  }
  func.func @transform_6(%arg0: i32, %arg1: i32) -> (i32, i32) {
    %c0_i32 = arith.constant 0 : i32
    %c0_i32_0 = arith.constant 0 : i32
    %c0_i32_1 = arith.constant 0 : i32
    return %c0_i32, %c0_i32_0 : i32, i32
  }
  func.func @transform_7(%arg0: i32, %arg1: i32) -> (i32, i32, i32, i32) {
    %c0_i32 = arith.constant 0 : i32
    %c0_i32_0 = arith.constant 0 : i32
    %c0_i32_1 = arith.constant 0 : i32
    return %arg0, %arg1, %c0_i32, %c0_i32_0 : i32, i32, i32, i32
  }
}

</mosaic_0001>

<bundles_post_ra>
// kernel: tpu_custom_call.1
= control target key start
LH: loop header
LB: loop body
LE: loop exit
PB: predicated region body
PF: predicated region fallthrough
CT: control target
= control target key end

     0   :  { %12 = vsyncpa [#allocation4], 0  ;;  %s3875_s0 = inlined_call_operand.vmem [shape: f32[2,16,16,4], index: 0, kind: input, shape index: {}]   ;;  %s3876_s1 = inlined_call_operand.vmem [shape: f32[2,16,16,4], index: 1, kind: input, shape index: {}]   ;;  %s3877_s2 = inlined_call_operand.vmem [shape: f32[2,16,16,4], index: 2, kind: input, shape index: {}]   ;;  %s3878_s3 = inlined_call_operand.vmem [shape: f32[4,128], index: 3, kind: input, shape index: {}]   ;;  %s3879_s4 = inlined_call_operand.vmem [shape: f32[1,128], index: 4, kind: input, shape index: {}]   ;;  %s3880_s5 = inlined_call_operand.vmem [shape: f32[9,128], index: 5, kind: input, shape index: {}]   ;;  %s3881_s6 = inlined_call_operand.vmem [shape: f32[1,128], index: 6, kind: input, shape index: {}]   ;;  %s3882_s7 = inlined_call_operand.hbm [shape: f32[2,16,16,128], index: 7, kind: output, shape index: {}]  }
   0x1   :  { %14 = vsyncpa [#allocation4 + $0x1], 0  ;;  %s2171_s1 = smov 0   ;;  %s2173_s2 = smov 0  }
   0x2   :  { %s2175_s24 = smov 0   ;;  %s2177_s25 = smov 0  }
   0x3   :  { %s2179_s26 = smov 0   ;;  %s2181_s27 = smov 0  }
   0x4 LB: > { %s1836_s28 = sadd.s32 4294967295, %s2126_s27   ;;  %s1837_s29 = sadd.s32 4294967294, %s2126_s27   ;;  %s2126_s27 = sphi %s2181_s27, %s20_s27   ;;  %s2122_s26 = sphi %s2179_s26, %s3967_s26   ;;  %s2118_s25 = sphi %s2177_s25, %s3966_s25   ;;  %s2114_s24 = sphi %s2175_s24, %s3965_s24   ;;  %s2110_s2 = sphi %s2173_s2, %s3964_s2   ;;  %s2106_s1 = sphi %s2171_s1, %s3963_s1  }
   0x5   : > { %s32_s30 = sadd.s32 1, %s2122_s26  ;;  %s205_s8 = sadd.s32 1, %s2114_s24 }
   0x6   : > { %p34_p0 = scmp.ge.s32.totalorder %s32_s30, 2  ;;  %p215_p1 = scmp.ne.s32.totalorder %s2114_s24, %s2110_s2 }
   0x7   : > { %p216_p2 = scmp.eq.s32.totalorder %s1836_s28, 1  ;;  %p221_p3 = scmp.ne.s32.totalorder %s2110_s2, %s2106_s1 }
   0x8   : > { %s3969_s30 = smov (%p34_p0, %s32_s30), 0  ;;  %p222_p5 = scmp.eq.s32.totalorder %s1837_s29, 1 }
   0x9   : > { %p2211_p4 = por %p216_p2, %p215_p1  ;;  %s200_s10 = ssub.s32 %s2122_s26, %s3969_s30 }
   0xa   : > { %p1840_p6 = scmp.ge.s32.totalorder %s2126_s27, 1  ;;  %p203_p7 = scmp.eq.s32.totalorder %s200_s10, 0 }
   0xb   : > { %p2218_p8 = por %p222_p5, %p221_p3  ;;  %p282_p9 = scmp.lt.s32.totalorder %s2126_s27, 3 }
   0xc   : > { %s2224_s12 = scalar_select %p203_p7, %s2114_s24, %s205_s8  }
   0xd   : > { %p283_p10 = pnand %p1840_p6, %p282_p9 }
   0xf   : > { %286 = sbr.rel (%p283_p10) target bundleno = 458 (0x1ca), region = 48 }
  0x16   : > { %v351_v0 = vld [vmem:[%s3878_s3] sm:$0xf]  ;;  %vm488_vm0 = vcmask 1043456   ;;  %p330_p11 = scmp.lt.s32.totalorder %s2118_s25, 1  ;;  %vm391_vm1 = vcmask 31744   ;;  %v755_v33 = vlaneseq  ;;  %s326_s29 = sand.u32 1, %s2110_s2  }
  0x17   : > { %1928 = vmatprep.subr.msk.mxu0 %vm488_vm0, %v351_v0  ;;  %1978 = vmatprep.subr.msk.mxu1 %vm488_vm0, %v351_v0  ;;  %v2303_v34 = vld [vmem:[%s3879_s4] ss:$0 sm:$0xff]  ;;  %v2313_v36 = vld [vmem:[%s3880_s5 + $0x1] ss:$0 sm:$0xff]  ;;  %v2320_v38 = vld [vmem:[%s3880_s5 + $0x2] ss:$0 sm:$0xff] }
  0x18   : > { %1929 = vmatpush3.msk.msra.mxu0 %vm488_vm0, %v351_v0  ;;  %1979 = vmatpush3.msk.msra.mxu1 %vm488_vm0, %v351_v0  ;;  %s331_s15 = scalar_select %p330_p11, %s2118_s25, 1  ;;  %v2308_v35 = vld [vmem:[%s3880_s5] ss:$0 sm:$0xff]  ;;  %v2315_v37 = vshrl.u32 %v755_v33, 7  ;;  %v2325_v40 = vld [vmem:[%s3880_s5 + $0x3] ss:$0 sm:$0xff] }
  0x19   : > { %v2330_v41 = vld [vmem:[%s3880_s5 + $0x4] ss:$0 sm:$0xff]  ;;  %v795_v44 = vmul.f32 0.0, %v2308_v35  ;;  %v1134_v45 = vmul.f32 0.0, %v2313_v36  ;;  %v2338_v46 = vld [vmem:[%s3880_s5 + $0x5] ss:$0 sm:$0xff] }
  0x1a   : > { %s1893_s16 = sshll.u32 %s331_s15, 8  ;;  %v1341_v50 = vmul.f32 0.0, %v2320_v38  ;;  %v2343_v51 = vadd.s32 8, %v2315_v37  ;;  %v2350_v54 = vld [vmem:[%s3880_s5 + $0x6] ss:$0 sm:$0xff]  ;;  %vm1062_vm2 = vcmp.lt.s32.totalorder %v2315_v37, 1 }
  0x1b   : > { %s2234_s19 = scalar_lea.vmem %s3875_s0, %s1893_s16  ;;  %v2365_v61 = vld [vmem:[%s3880_s5 + $0x7] ss:$0 sm:$0xff]  ;;  %vm1095_vm3 = vcmp.ge.s32.totalorder %v2315_v37, 1  ;;  %vm1543_vm4 = vcmp.lt.s32.totalorder %v2315_v37, 7  ;;  %s1841_s8 = sshll.u32 %s326_s29, 8 }
  0x1c   : > { %v353_v1 = vld [vmem:[%s2234_s19] sm:$0xff]  ;;  %v354_v3 = vld [vmem:[%s2234_s19 + $0x8] sm:$0xff]  ;;  %v355_v5 = vld [vmem:[%s2234_s19 + $0x10] sm:$0xff]  ;;  %vm1577_vm5 = vcmp.lt.s32.totalorder %v2343_v51, 15  ;;  %s2688_s14 = scalar_lea.vmem [#allocation3], %s1841_s8  ;;  %s1894_s28 = sshll.u32 %s2118_s25, 12 }
  0x1d   : > { %v369_v2 = vld [vmem:[%s2234_s19 + $0x80] sm:$0xff]  ;;  %1930 = vmatprep.mubr.msk.f32.mxu0 %vm391_vm1, %v353_v1  ;;  %v370_v4 = vld [vmem:[%s2234_s19 + $0x88] sm:$0xff]  ;;  %v371_v6 = vld [vmem:[%s2234_s19 + $0x90] sm:$0xff]  ;;  %s1730_s8 = sshll.u32 %s2688_s14, 4  ;;  %s3819_s25 = scalar_lea.hbm %s3882_s7, %s1894_s28  ;;  %s3821_s8 = int_to_ptr.vmem [resolvable:$true] %s1730_s8 }
  0x1e   : > { %1954 = vmatprep.mubr.msk.f32.mxu1 %vm391_vm1, %v369_v2  ;;  %1931 = vmatmul.mubr.msk.f32.vlgmr.msra.gmra.mrb[0].mxu0 %vm391_vm1, %v354_v3  ;;  %v356_v7 = vld [vmem:[%s2234_s19 + $0x18] sm:$0xff]  ;;  %v357_v9 = vld [vmem:[%s2234_s19 + $0x20] sm:$0xff]  ;;  %v358_v11 = vld [vmem:[%s2234_s19 + $0x28] sm:$0xff]  ;;  %s3829_s15 = scalar_lea.sflag [#allocation4], %s326_s29  ;;  %s2048_s16 = scalar_lea.vmem %s3821_s8, 4096 }
  0x1f   : > { %1955 = vmatmul.mubr.msk.f32.vlgmr.msra.gmra.mrb[0].mxu1 %vm391_vm1, %v370_v4  ;;  %1933 = vmatprep.mubr.msk.f32.mxu0 %vm391_vm1, %v355_v5  ;;  %v372_v8 = vld [vmem:[%s2234_s19 + $0x98] sm:$0xff]  ;;  %v373_v10 = vld [vmem:[%s2234_s19 + $0xa0] sm:$0xff]  ;;  %v374_v12 = vld [vmem:[%s2234_s19 + $0xa8] sm:$0xff]  ;;  %p2049_p12 = scmp.ne.s32.totalorder %s3821_s8, %s2048_s16  ;;  %s2128_s17 = smov [#allocation3]  }
  0x20   : > { %1957 = vmatprep.mubr.msk.f32.mxu1 %vm391_vm1, %v371_v6  ;;  %v359_v13 = vld [vmem:[%s2234_s19 + $0x30] sm:$0xff]  ;;  %v360_v15 = vld [vmem:[%s2234_s19 + $0x38] sm:$0xff]  ;;  %v361_v17 = vld [vmem:[%s2234_s19 + $0x40] sm:$0xff]  ;;  %s2052_s18 = sshll.u32 %s2128_s17, 4  ;;  %s2053_s18 = int_to_ptr.vmem [resolvable:$false] %s2052_s18 }
  0x21   : > { %v375_v14 = vld [vmem:[%s2234_s19 + $0xb0] sm:$0xff]  ;;  %v376_v16 = vld [vmem:[%s2234_s19 + $0xb8] sm:$0xff]  ;;  %v377_v18 = vld [vmem:[%s2234_s19 + $0xc0] sm:$0xff]  ;;  %p2050_p13 = pnand %p2049_p12, %p2211_p4  ;;  %p2055_p1 = scmp.lt.s32.totalorder %s3821_s8, %s2053_s18 }
  0x22   : > { %1934 = vmatmul.mubr.msk.f32.gmra.mrb[2].mxu0 %vm391_vm1, %v356_v7  ;;  %v362_v19 = vld [vmem:[%s2234_s19 + $0x48] sm:$0xff]  ;;  %v363_v21 = vld [vmem:[%s2234_s19 + $0x50] sm:$0xff]  ;;  %v364_v23 = vld [vmem:[%s2234_s19 + $0x58] sm:$0xff] }
  0x23   : > { %1958 = vmatmul.mubr.msk.f32.gmra.mrb[2].mxu1 %vm391_vm1, %v372_v8  ;;  %1936 = vmatprep.mubr.msk.f32.mxu0 %vm391_vm1, %v357_v9  ;;  %v378_v20 = vld [vmem:[%s2234_s19 + $0xc8] sm:$0xff]  ;;  %v379_v22 = vld [vmem:[%s2234_s19 + $0xd0] sm:$0xff]  ;;  %v380_v24 = vld [vmem:[%s2234_s19 + $0xd8] sm:$0xff]  ;;  %p2051_p0 = pneg %p2050_p13 }
  0x24   : > { %1960 = vmatprep.mubr.msk.f32.mxu1 %vm391_vm1, %v373_v10  ;;  %v365_v25 = vld [vmem:[%s2234_s19 + $0x60] sm:$0xff]  ;;  %v366_v27 = vld [vmem:[%s2234_s19 + $0x68] sm:$0xff]  ;;  %v367_v29 = vld [vmem:[%s2234_s19 + $0x70] sm:$0xff] }
  0x25   : > { %v381_v26 = vld [vmem:[%s2234_s19 + $0xe0] sm:$0xff]  ;;  %v382_v28 = vld [vmem:[%s2234_s19 + $0xe8] sm:$0xff]  ;;  %v383_v30 = vld [vmem:[%s2234_s19 + $0xf0] sm:$0xff] }
  0x26   : > { %1937 = vmatmul.mubr.msk.f32.gmra.mrb[4].mxu0 %vm391_vm1, %v358_v11  ;;  %v368_v31 = vld [vmem:[%s2234_s19 + $0x78] sm:$0xff]  ;;  %v2376_v4 = vld [vmem:[%s3880_s5 + $0x8] ss:$0 sm:$0xff] }
  0x27   : > { %1961 = vmatmul.mubr.msk.f32.gmra.mrb[4].mxu1 %vm391_vm1, %v374_v12  ;;  %1939 = vmatprep.mubr.msk.f32.mxu0 %vm391_vm1, %v359_v13  ;;  %v384_v32 = vld [vmem:[%s2234_s19 + $0xf8] sm:$0xff]  ;;  %s2054_s19 = scalar_lea.vmem %s2053_s18, 8192 }
  0x28   : > { %1963 = vmatprep.mubr.msk.f32.mxu1 %vm391_vm1, %v375_v14  ;;  %p2056_p2 = scmp.lt.s32.totalorder %s2054_s19, %s2048_s16 }
  0x2a   : > { %1940 = vmatmul.mubr.msk.f32.gmra.mrb[6].mxu0 %vm391_vm1, %v360_v15  ;;  %p2057_p3 = por %p2056_p2, %p2055_p1 }
  0x2b   : > { %1964 = vmatmul.mubr.msk.f32.gmra.mrb[6].mxu1 %vm391_vm1, %v376_v16  ;;  %1942 = vmatprep.mubr.msk.f32.mxu0 %vm391_vm1, %v361_v17 }
  0x2c   : > { %1966 = vmatprep.mubr.msk.f32.mxu1 %vm391_vm1, %v377_v18  ;;  %p2058_p5 = pnand %p2057_p3, %p2051_p0 }
  0x2e   : > { %1943 = vmatmul.mubr.msk.f32.gmra.mrb[8].mxu0 %vm391_vm1, %v362_v19 }
  0x2f   : > { %1967 = vmatmul.mubr.msk.f32.gmra.mrb[8].mxu1 %vm391_vm1, %v378_v20  ;;  %1945 = vmatprep.mubr.msk.f32.mxu0 %vm391_vm1, %v363_v21 }
  0x30   : > { %1969 = vmatprep.mubr.msk.f32.mxu1 %vm391_vm1, %v379_v22 }
  0x32   : > { %1946 = vmatmul.mubr.msk.f32.gmra.mrb[10].mxu0 %vm391_vm1, %v364_v23 }
  0x33   : > { %1970 = vmatmul.mubr.msk.f32.gmra.mrb[10].mxu1 %vm391_vm1, %v380_v24  ;;  %1948 = vmatprep.mubr.msk.f32.mxu0 %vm391_vm1, %v365_v25 }
  0x34   : > { %1972 = vmatprep.mubr.msk.f32.mxu1 %vm391_vm1, %v381_v26 }
  0x36   : > { %1949 = vmatmul.mubr.msk.f32.gmra.mrb[12].mxu0 %vm391_vm1, %v366_v27 }
  0x37   : > { %1973 = vmatmul.mubr.msk.f32.gmra.mrb[12].mxu1 %vm391_vm1, %v382_v28  ;;  %1951 = vmatprep.mubr.msk.f32.mxu0 %vm391_vm1, %v367_v29 }
  0x38   : > { %1975 = vmatprep.mubr.msk.f32.mxu1 %vm391_vm1, %v383_v30 }
  0x3a   : > { %1952 = vmatmul.mubr.msk.f32.gmra.mrb[14].mxu0 %vm391_vm1, %v368_v31 }
  0x3b   : > { %1976 = vmatmul.mubr.msk.f32.gmra.mrb[14].mxu1 %vm391_vm1, %v384_v32 }
  0xf1   : > { %v1932_v39 = vpop.f32.mrb[0].mxu0 }
  0xf2   : > { %v1956_v42 = vpop.f32.mrb[0].mxu1  ;;  %v564_v43 = vadd.f32 %v1932_v39, %v2303_v34  ;;  %v558_v48 = vpop.f32.mrb[1].mxu0 }
  0xf3   : > { %v644_v47 = vadd.f32 %v1956_v42, %v2303_v34  ;;  %v638_v49 = vpop.f32.mrb[1].mxu1  ;;  %v559_v55 = vadd.f32 %v2303_v34, %v558_v48 }
  0xf4   : > { %v865_v52 = vmul.f32 %v2325_v40, %v564_v43  ;;  %v1172_v53 = vmul.f32 %v2330_v41, %v564_v43  ;;  %v639_v56 = vadd.f32 %v2303_v34, %v638_v49  ;;  %v798_v57 = vmul.f32 %v2308_v35, %v564_v43 }
  0xf5   : > { %v2356_v58 = vmul.f32 %v2313_v36, %v564_v43  ;;  %v2359_v59 = vmul.f32 %v2320_v38, %v564_v43  ;;  %v1379_v60 = vmul.f32 %v2338_v46, %v564_v43  ;;  %v1935_v62 = vpop.f32.mrb[2].mxu0  ;;  %v2368_v2 = vmul.f32 %v2308_v35, %v644_v47 }
  0xf6   : > { %v1959_v63 = vpop.f32.mrb[2].mxu1  ;;  %v897_v0 = vadd.f32 %v865_v52, %v795_v44  ;;  %v1204_v1 = vadd.f32 %v1172_v53, %v1134_v45  ;;  %v2371_v3 = vmul.f32 %v2325_v40, %v644_v47  ;;  %v568_v5 = vpop.f32.mrb[3].mxu0  ;;  %v2381_v8 = vmul.f32 %v2350_v54, %v644_v47 }
  0xf7   : > { %v648_v6 = vpop.f32.mrb[3].mxu1  ;;  %v2378_v7 = vadd.f32 %v1379_v60, %v1341_v50  ;;  %v2384_v9 = vmul.f32 %v2313_v36, %v644_v47  ;;  %v2387_v10 = vmul.f32 %v2330_v41, %v644_v47  ;;  %v2390_v11 = vmul.f32 %v2365_v61, %v644_v47 }
  0xf8   : > { %3885 = vst [vmem:[#allocation6_spill] sm:$0xff] %v2371_v3  ;;  %3886 = vst [vmem:[#allocation7_spill] sm:$0xff] %v2381_v8  ;;  %v2393_v12 = vmul.f32 %v2320_v38, %v644_v47  ;;  %v2396_v13 = vmul.f32 %v2338_v46, %v644_v47  ;;  %v864_v14 = vmul.f32 %v2325_v40, %v559_v55 }
  0xf9   : > { %3887 = vst [vmem:[#allocation8_spill] sm:$0xff] %v2387_v10  ;;  %3888 = vst [vmem:[#allocation9_spill] sm:$0xff] %v2390_v11  ;;  %v2400_v15 = vmul.f32 %v2376_v4, %v644_v47  ;;  %v2403_v16 = vmul.f32 %v2308_v35, %v559_v55  ;;  %v1171_v17 = vmul.f32 %v2330_v41, %v559_v55  ;;  %v1938_v19 = vpop.f32.mrb[4].mxu0 }
  0xfa   : > { %3889 = vst [vmem:[#allocation10_spill] sm:$0xff] %v2396_v13  ;;  %v1378_v18 = vmul.f32 %v2338_v46, %v559_v55  ;;  %v1962_v20 = vpop.f32.mrb[4].mxu1  ;;  %v2407_v21 = vadd.f32 %v864_v14, %v795_v44  ;;  %v2410_v22 = vmul.f32 %v2313_v36, %v559_v55  ;;  %v2413_v23 = vmul.f32 %v2320_v38, %v559_v55  ;;  %v578_v25 = vpop.f32.mrb[5].mxu0 }
  0xfb   : > { %3890 = vst [vmem:[#allocation11_spill] sm:$0xff] %v2400_v15  ;;  %v2416_v24 = vmul.f32 %v2308_v35, %v639_v56  ;;  %v658_v26 = vpop.f32.mrb[5].mxu1  ;;  %v2418_v27 = vadd.f32 %v1171_v17, %v1134_v45  ;;  %v2423_v29 = vmul.f32 %v2325_v40, %v639_v56  ;;  %v2426_v30 = vmul.f32 %v2350_v54, %v639_v56 }
  0xfc   : > { %v2420_v28 = vadd.f32 %v1378_v18, %v1341_v50  ;;  %v2429_v31 = vmul.f32 %v2313_v36, %v639_v56  ;;  %v2432_v32 = vmul.f32 %v2330_v41, %v639_v56  ;;  %v2435_v33 = vmul.f32 %v2365_v61, %v639_v56 }
  0xfd   : > { %3891 = vst [vmem:[#allocation12_spill] sm:$0xff] %v2423_v29  ;;  %3892 = vst [vmem:[#allocation13_spill] sm:$0xff] %v2426_v30  ;;  %v2438_v39 = vmul.f32 %v2320_v38, %v639_v56  ;;  %v2441_v42 = vmul.f32 %v2338_v46, %v639_v56  ;;  %v2444_v43 = vmul.f32 %v2376_v4, %v639_v56  ;;  %v2448_v47 = vpop.f32.mrb[6].mxu0 }
  0xfe   : > { %3893 = vst [vmem:[#allocation14_spill] sm:$0xff] %v2432_v32  ;;  %3894 = vst [vmem:[#allocation15_spill] sm:$0xff] %v2435_v33  ;;  %v574_v44 = vadd.f32 %v1935_v62, %v2303_v34  ;;  %v654_v45 = vadd.f32 %v1959_v63, %v2303_v34  ;;  %v2450_v48 = vpop.f32.mrb[6].mxu1  ;;  %v2453_v49 = vadd.f32 %v2303_v34, %v568_v5  ;;  %v2464_v55 = vpop.f32.mrb[7].mxu0 }
  0xff   : > { %3895 = vst [vmem:[#allocation16_spill] sm:$0xff] %v2441_v42  ;;  %3896 = vst [vmem:[#allocation17_spill] sm:$0xff] %v2444_v43  ;;  %v2456_v50 = vadd.f32 %v2303_v34, %v648_v6  ;;  %v2459_v52 = vadd.f32 %v1938_v19, %v2303_v34  ;;  %v2462_v53 = vadd.f32 %v1962_v20, %v2303_v34  ;;  %v2466_v56 = vpop.f32.mrb[7].mxu1 }
 0x100   : > { %v867_v60 = vmul.f32 %v2325_v40, %v574_v44  ;;  %v967_v62 = vmul.f32 %v2350_v54, %v574_v44  ;;  %v2471_v63 = vadd.f32 %v2303_v34, %v578_v25  ;;  %v2474_v5 = vadd.f32 %v2303_v34, %v658_v26 }
 0x101   : > { %v2477_v6 = vmul.f32 %v2308_v35, %v574_v44  ;;  %v1174_v14 = vmul.f32 %v2330_v41, %v574_v44  ;;  %v1241_v17 = vmul.f32 %v2365_v61, %v574_v44  ;;  %v1381_v18 = vmul.f32 %v2338_v46, %v574_v44  ;;  %v2491_v26 = vpop.f32.mrb[8].mxu0 }
 0x102   : > { %v2482_v19 = vadd.f32 %v867_v60, %v798_v57  ;;  %v2484_v20 = vadd.f32 %v967_v62, %v897_v0  ;;  %v2487_v43 = vmul.f32 %v2313_v36, %v574_v44  ;;  %v1448_v25 = vmul.f32 %v2376_v4, %v574_v44  ;;  %v2493_v42 = vpop.f32.mrb[8].mxu1  ;;  %v2503_v60 = vpop.f32.mrb[9].mxu0 }
 0x103   : > { %v2496_v33 = vadd.f32 %v1174_v14, %v2356_v58  ;;  %v1273_v30 = vadd.f32 %v1241_v17, %v1204_v1  ;;  %v2499_v57 = vadd.f32 %v1381_v18, %v2359_v59  ;;  %v883_v0 = vmul.f32 %v2325_v40, %v654_v45  ;;  %3897 = vst [vmem:[#allocation18_spill] sm:$0xff] %v2503_v60  ;;  %v2505_v62 = vpop.f32.mrb[9].mxu1 }
 0x104   : > { %3898 = vst [vmem:[#allocation19_spill] sm:$0xff] %v2505_v62  ;;  %v1046_v32 = vrot.slane %v2484_v20, 7  ;;  %v2509_v29 = vmul.f32 %v2320_v38, %v574_v44  ;;  %v1480_v58 = vadd.f32 %v1448_v25, %v2378_v7  ;;  %v2513_v1 = vmul.f32 %v2308_v35, %v654_v45 }
 0x105   : > { %v2517_v59 = vadd.f32 %v883_v0, %v2368_v2  ;;  %v2520_v14 = vmul.f32 %v2350_v54, %v654_v45  ;;  %v2523_v17 = vmul.f32 %v2313_v36, %v654_v45  ;;  %v1190_v18 = vmul.f32 %v2330_v41, %v654_v45  ;;  %v2534_v25 = vpop.f32.mrb[10].mxu0 }
 0x106   : > { %v1527_v44 = vrot.slane %v1480_v58, 1  ;;  %v2528_v7 = vmul.f32 %v2365_v61, %v654_v45  ;;  %v2531_v20 = vmul.f32 %v2320_v38, %v654_v45  ;;  %v1397_v2 = vmul.f32 %v2338_v46, %v654_v45  ;;  %3901 = vst [vmem:[#allocation22_spill] sm:$0xff] %v2534_v25  ;;  %v2536_v0 = vpop.f32.mrb[10].mxu1  ;;  %v2548_v11 = vpop.f32.mrb[11].mxu0 }
 0x107   : > { %3899 = vst [vmem:[#allocation20_spill] sm:$0xff] %v2520_v14  ;;  %3902 = vst [vmem:[#allocation23_spill] sm:$0xff] %v2536_v0  ;;  %v2539_v15 = vadd.f32 %v1190_v18, %v2384_v9  ;;  %v2542_v13 = vmul.f32 %v2376_v4, %v654_v45  ;;  %v866_v58 = vmul.f32 %v2325_v40, %v2453_v49  ;;  %v2550_v10 = vpop.f32.mrb[11].mxu1 }
 0x108   : > { %3900 = vst [vmem:[#allocation21_spill] sm:$0xff] %v2528_v7  ;;  %v966_v7 = vmul.f32 %v2350_v54, %v2453_v49  ;;  %3904 = vst [vmem:[#allocation25_spill] sm:$0xff] %v2548_v11  ;;  %v2553_v14 = vadd.f32 %v1397_v2, %v2393_v12  ;;  %v2557_v9 = vmul.f32 %v2308_v35, %v2453_v49 }
 0x109   : > { %3903 = vst [vmem:[#allocation24_spill] sm:$0xff] %v2542_v13  ;;  %3905 = vst [vmem:[#allocation26_spill] sm:$0xff] %v2550_v10  ;;  %v1173_v45 = vmul.f32 %v2330_v41, %v2453_v49  ;;  %v1240_v18 = vmul.f32 %v2365_v61, %v2453_v49  ;;  %v2564_v13 = vadd.f32 %v866_v58, %v2403_v16  ;;  %v2581_v58 = vpop.f32.mrb[12].mxu0 }
 0x10a   : > { %v998_v8 = vadd.f32 %v966_v7, %v2407_v21  ;;  %v1380_v12 = vmul.f32 %v2338_v46, %v2453_v49  ;;  %v1447_v2 = vmul.f32 %v2376_v4, %v2453_v49  ;;  %v2573_v3 = vmul.f32 %v2313_v36, %v2453_v49  ;;  %3906 = vst [vmem:[#allocation27_spill] sm:$0xff] %v2581_v58  ;;  %v2583_v21 = vpop.f32.mrb[12].mxu1 }
 0x10b   : > { %v2576_v10 = vadd.f32 %v1173_v45, %v2410_v22  ;;  %v1272_v11 = vadd.f32 %v1240_v18, %v2418_v27  ;;  %v882_v16 = vmul.f32 %v2325_v40, %v2456_v50  ;;  %3907 = vst [vmem:[#allocation28_spill] sm:$0xff] %v2583_v21  ;;  %v2587_v0 = vmul.f32 %v2320_v38, %v2453_v49  ;;  %v2593_v45 = vpop.f32.mrb[13].mxu0  ;;  %v2595_v27 = vpop.f32.mrb[13].mxu1 }
 0x10c   : > { %v1030_v7 = vrot.slane %v998_v8, 7  ;;  %v2590_v25 = vadd.f32 %v1380_v12, %v2413_v23  ;;  %v1479_v22 = vadd.f32 %v1447_v2, %v2420_v28  ;;  %3908 = vst [vmem:[#allocation29_spill] sm:$0xff] %v2593_v45  ;;  %3909 = vst [vmem:[#allocation30_spill] sm:$0xff] %v2595_v27  ;;  %v2600_v18 = vmul.f32 %v2308_v35, %v2456_v50 }
 0x10d   : > { %v2603_v8 = vadd.f32 %v882_v16, %v2416_v24  ;;  %v2607_v49 = vmul.f32 %v2350_v54, %v2456_v50  ;;  %v1189_v23 = vmul.f32 %v2330_v41, %v2456_v50  ;;  %v2617_v27 = vmul.f32 %v2313_v36, %v2456_v50  ;;  %v2626_v21 = vpop.f32.mrb[14].mxu0 }
 0x10e   : > { %v1063_v28 = vsel %vm1062_vm2, %v1030_v7, %v1046_v32  ;;  %v1079_v12 = vsel %vm1062_vm2, %v1046_v32, %v1030_v7  ;;  %v1511_v2 = vrot.slane %v1479_v22, 1  ;;  %v1396_v45 = vmul.f32 %v2338_v46, %v2456_v50  ;;  %3911 = vst [vmem:[#allocation32_spill] sm:$0xff] %v2626_v21  ;;  %v2628_v58 = vpop.f32.mrb[14].mxu1 }
 0x10f   : > { %3910 = vst [vmem:[#allocation31_spill] sm:$0xff] %v2607_v49  ;;  %v1097_v24 = vsel %vm1095_vm3, %v1079_v12, 0.0  ;;  %v1305_v16 = vadd.f32 %v1273_v30, %v1063_v28  ;;  %v2622_v49 = vadd.f32 %v1189_v23, %v2429_v31  ;;  %3912 = vst [vmem:[#allocation33_spill] sm:$0xff] %v2628_v58  ;;  %v2638_v30 = vmul.f32 %v2365_v61, %v2456_v50  ;;  %v2645_v23 = vld [vmem:[%s3881_s6] ss:$0 sm:$0xff] }
 0x110   : > { %v1304_v32 = vadd.f32 %v1272_v11, %v1097_v24  ;;  %v1544_v7 = vsel %vm1543_vm4, %v1511_v2, %v1527_v44  ;;  %v1560_v22 = vsel %vm1543_vm4, %v1527_v44, %v1511_v2  ;;  %v2649_v11 = vmul.f32 %v2320_v38, %v2456_v50 }
 0x111   : > { %3913 = vst [vmem:[#allocation34_spill] sm:$0xff] %v2638_v30  ;;  %v1579_v31 = vsel %vm1577_vm5, %v1560_v22, 0.0  ;;  %v2652_v28 = vadd.f32 %v1396_v45, %v2438_v39  ;;  %v869_v44 = vmul.f32 %v2325_v40, %v2459_v52  ;;  %v2658_v24 = vmul.f32 %v2376_v4, %v2456_v50 }
 0x112   : > { %v1610_v12 = vadd.f32 %v1544_v7, %v1304_v32  ;;  %v1611_v2 = vadd.f32 %v1579_v31, %v1305_v16  ;;  %v969_v22 = vmul.f32 %v2350_v54, %v2459_v52  ;;  %v2664_v30 = vmul.f32 %v2308_v35, %v2459_v52 }
 0x113   : > { %3914 = vst [vmem:[#allocation35_spill] sm:$0xff] %v2658_v24  ;;  %v2667_v58 = vadd.f32 %v869_v44, %v2477_v6  ;;  %v1176_v39 = vmul.f32 %v2330_v41, %v2459_v52  ;;  %v1243_v45 = vmul.f32 %v2365_v61, %v2459_v52  ;;  %v1383_v7 = vmul.f32 %v2338_v46, %v2459_v52 }
 0x114   : > { %v1649_v16 = vadd.f32 %v2645_v23, %v1610_v12  ;;  %v1650_v50 = vadd.f32 %v2645_v23, %v1611_v2  ;;  %v1001_v32 = vadd.f32 %v969_v22, %v2482_v19  ;;  %v2680_v31 = vmul.f32 %v2313_v36, %v2459_v52  ;;  %v2703_v2 = vpop.f32.mrb[15].mxu0 }
 0x115   : > { %v2683_v6 = vadd.f32 %v1176_v39, %v2487_v43  ;;  %v1275_v44 = vadd.f32 %v1243_v45, %v2496_v33  ;;  %v1450_v24 = vmul.f32 %v2376_v4, %v2459_v52  ;;  %v2694_v19 = vmul.f32 %v2320_v38, %v2459_v52  ;;  %3915 = vst [vmem:[#allocation36_spill] sm:$0xff] %v2703_v2 }
 0x116   : > { %1681 = vst [vmem:[%s2688_s14] sm:$0xff] %v1649_v16  ;;  %1682 = vst [vmem:[%s2688_s14 + $0x8] sm:$0xff] %v1650_v50  ;;  %v2697_v12 = vadd.f32 %v1383_v7, %v2509_v29  ;;  %v885_v43 = vmul.f32 %v2325_v40, %v2462_v53  ;;  %v985_v33 = vmul.f32 %v2350_v54, %v2462_v53  ;;  %v1047_v45 = vrot.slane %v1001_v32, 7 }
 0x117   : > { %v1482_v22 = vadd.f32 %v1450_v24, %v2499_v57  ;;  %v2708_v39 = vmul.f32 %v2308_v35, %v2462_v53  ;;  %v1192_v52 = vmul.f32 %v2330_v41, %v2462_v53  ;;  %v1259_v29 = vmul.f32 %v2365_v61, %v2462_v53 }
 0x118   : > { %v2715_v16 = vadd.f32 %v885_v43, %v2513_v1  ;;  %v1017_v50 = vadd.f32 %v985_v33, %v2517_v59  ;;  %v1399_v7 = vmul.f32 %v2338_v46, %v2462_v53  ;;  %v2722_v57 = vmul.f32 %v2313_v36, %v2462_v53  ;;  %v2739_v33 = vpop.f32.mrb[15].mxu1 }
 0x119   : > { %v2725_v24 = vadd.f32 %v1192_v52, %v2523_v17  ;;  %v1291_v2 = vadd.f32 %v1259_v29, %v2539_v15  ;;  %v1466_v32 = vmul.f32 %v2376_v4, %v2462_v53  ;;  %v1528_v21 = vrot.slane %v1482_v22, 1  ;;  %3916 = vst [vmem:[#allocation37_spill] sm:$0xff] %v2739_v33 }
 0x11a   : > { %v2732_v1 = vmul.f32 %v2320_v38, %v2462_v53  ;;  %v2735_v59 = vadd.f32 %v1399_v7, %v2531_v20  ;;  %v868_v43 = vmul.f32 %v2325_v40, %v2471_v63  ;;  %v1055_v17 = vrot.slane %v1017_v50, 7 }
 0x11b   : > { %v2742_v52 = vadd.f32 %v1466_v32, %v2553_v14  ;;  %v968_v15 = vmul.f32 %v2350_v54, %v2471_v63  ;;  %v1175_v22 = vmul.f32 %v2330_v41, %v2471_v63  ;;  %v2750_v53 = vmul.f32 %v2308_v35, %v2471_v63 }
 0x11c   : > { %v2753_v20 = vadd.f32 %v868_v43, %v2557_v9  ;;  %v1242_v29 = vmul.f32 %v2365_v61, %v2471_v63  ;;  %v1382_v14 = vmul.f32 %v2338_v46, %v2471_v63  ;;  %v2762_v7 = vmul.f32 %v2313_v36, %v2471_v63 }
 0x11d   : > { %v1000_v50 = vadd.f32 %v968_v15, %v2564_v13  ;;  %v2765_v32 = vadd.f32 %v1175_v22, %v2573_v3  ;;  %v1449_v33 = vmul.f32 %v2376_v4, %v2471_v63  ;;  %v2772_v43 = vmul.f32 %v2320_v38, %v2471_v63 }
 0x11e   : > { %v1274_v9 = vadd.f32 %v1242_v29, %v2576_v10  ;;  %v2775_v62 = vadd.f32 %v1382_v14, %v2587_v0  ;;  %v884_v13 = vmul.f32 %v2325_v40, %v2474_v5  ;;  %v1536_v15 = vrot.slane %v2742_v52, 1 }
 0x11f   : > { %3917 = vst [vmem:[#allocation38_spill] sm:$0xff] %v2772_v43  ;;  %v1031_v60 = vrot.slane %v1000_v50, 7  ;;  %v1481_v3 = vadd.f32 %v1449_v33, %v2590_v25  ;;  %v984_v22 = vmul.f32 %v2350_v54, %v2474_v5  ;;  %v2785_v10 = vmul.f32 %v2308_v35, %v2474_v5 }
 0x120   : > { %3918 = vst [vmem:[#allocation39_spill] sm:$0xff] %v2775_v62  ;;  %v2788_v63 = vadd.f32 %v884_v13, %v2600_v18  ;;  %v1191_v0 = vmul.f32 %v2330_v41, %v2474_v5  ;;  %v1258_v29 = vmul.f32 %v2365_v61, %v2474_v5 }
 0x121   : > { %3919 = vst [vmem:[#allocation40_spill] sm:$0xff] %v2785_v10  ;;  %v1064_v52 = vsel %vm1062_vm2, %v1031_v60, %v1047_v45  ;;  %v1080_v25 = vsel %vm1062_vm2, %v1047_v45, %v1031_v60  ;;  %v1512_v33 = vrot.slane %v1481_v3, 1  ;;  %v1016_v14 = vadd.f32 %v984_v22, %v2603_v8 }
 0x122   : > { %3920 = vst [vmem:[#allocation41_spill] sm:$0xff] %v2788_v63  ;;  %v1099_v50 = vsel %vm1095_vm3, %v1080_v25, 0.0  ;;  %v1307_v18 = vadd.f32 %v1275_v44, %v1064_v52  ;;  %v2802_v13 = vadd.f32 %v1191_v0, %v2617_v27  ;;  %v1290_v63 = vadd.f32 %v1258_v29, %v2622_v49 }
 0x123   : > { %v1306_v10 = vadd.f32 %v1274_v9, %v1099_v50  ;;  %v1545_v62 = vsel %vm1543_vm4, %v1512_v33, %v1528_v21  ;;  %v1561_v43 = vsel %vm1543_vm4, %v1528_v21, %v1512_v33  ;;  %v1039_v60 = vrot.slane %v1016_v14, 7 }
 0x124   : > { %v1581_v8 = vsel %vm1577_vm5, %v1561_v43, 0.0  ;;  %v1398_v45 = vmul.f32 %v2338_v46, %v2474_v5  ;;  %v1465_v27 = vmul.f32 %v2376_v4, %v2474_v5  ;;  %v594_v49 = vadd.f32 %v2448_v47, %v2303_v34 }
 0x125   : > { %v1612_v44 = vadd.f32 %v1545_v62, %v1306_v10  ;;  %v1613_v9 = vadd.f32 %v1581_v8, %v1307_v18  ;;  %v1072_v21 = vsel %vm1062_vm2, %v1039_v60, %v1055_v17  ;;  %v1088_v3 = vsel %vm1062_vm2, %v1055_v17, %v1039_v60 }
 0x126   : > { %v1115_v43 = vsel %vm1095_vm3, %v1088_v3, 0.0  ;;  %v1323_v22 = vadd.f32 %v1291_v2, %v1072_v21  ;;  %v2824_v0 = vadd.f32 %v1398_v45, %v2649_v11  ;;  %v1497_v29 = vadd.f32 %v1465_v27, %v2652_v28 }
 0x127   : > { %v1651_v47 = vadd.f32 %v2645_v23, %v1612_v44  ;;  %v1652_v62 = vadd.f32 %v2645_v23, %v1613_v9  ;;  %v2831_v10 = vmul.f32 %v2313_v36, %v2474_v5  ;;  %v1322_v52 = vadd.f32 %v1290_v63, %v1115_v43 }
 0x128   : > { %v2835_v17 = vmul.f32 %v2320_v38, %v2474_v5  ;;  %v1520_v25 = vrot.slane %v1497_v29, 1  ;;  %v871_v2 = vmul.f32 %v2325_v40, %v594_v49  ;;  %v971_v11 = vmul.f32 %v2350_v54, %v594_v49 }
 0x129   : > { %1683 = vst [vmem:[%s2688_s14 + $0x10] sm:$0xff] %v1651_v47  ;;  %1684 = vst [vmem:[%s2688_s14 + $0x18] sm:$0xff] %v1652_v62  ;;  %v2842_v28 = vmul.f32 %v2308_v35, %v594_v49  ;;  %v1178_v33 = vmul.f32 %v2330_v41, %v594_v49  ;;  %v1245_v14 = vmul.f32 %v2365_v61, %v594_v49 }
 0x12a   : > { %v1385_v63 = vmul.f32 %v2338_v46, %v594_v49  ;;  %v1553_v5 = vsel %vm1543_vm4, %v1520_v25, %v1536_v15  ;;  %v1569_v50 = vsel %vm1543_vm4, %v1536_v15, %v1520_v25  ;;  %v2852_v18 = vadd.f32 %v871_v2, %v2664_v30 }
 0x12b   : > { %v1003_v60 = vadd.f32 %v971_v11, %v2667_v58  ;;  %v1597_v8 = vsel %vm1577_vm5, %v1569_v50, 0.0  ;;  %v1628_v45 = vadd.f32 %v1553_v5, %v1322_v52  ;;  %v2858_v27 = vadd.f32 %v1178_v33, %v2680_v31 }
 0x12c   : > { %v1277_v44 = vadd.f32 %v1245_v14, %v2683_v6  ;;  %v1629_v9 = vadd.f32 %v1597_v8, %v1323_v22  ;;  %v2862_v21 = vmul.f32 %v2313_v36, %v594_v49  ;;  %v2865_v30 = vadd.f32 %v1385_v63, %v2694_v19 }
 0x12d   : > { %v1452_v58 = vmul.f32 %v2376_v4, %v594_v49  ;;  %v1667_v15 = vadd.f32 %v2645_v23, %v1628_v45  ;;  %v1048_v3 = vrot.slane %v1003_v60, 7  ;;  %v2870_v43 = vmul.f32 %v2320_v38, %v594_v49 }
 0x12e   : > { %v674_v31 = vadd.f32 %v2450_v48, %v2303_v34  ;;  %v1668_v6 = vadd.f32 %v2645_v23, %v1629_v9  ;;  %v589_v29 = vadd.f32 %v2303_v34, %v2464_v55  ;;  %v2880_v19 = vadd.f32 %v2303_v34, %v2466_v56 }
 0x12f   : > { %v1484_v22 = vadd.f32 %v1452_v58, %v2697_v12  ;;  %1699 = vst [vmem:[%s2688_s14 + $0x90] sm:$0xff] %v1667_v15  ;;  %v2887_v62 = vadd.f32 %v2491_v26, %v2303_v34  ;;  %v2891_v48 = vadd.f32 %v2493_v42, %v2303_v34 }
 0x130   : > { %v887_v47 = vmul.f32 %v2325_v40, %v674_v31  ;;  %v987_v49 = vmul.f32 %v2350_v54, %v674_v31  ;;  %1700 = vst [vmem:[%s2688_s14 + $0x98] sm:$0xff] %v1668_v6  ;;  %v2895_v55 = vmul.f32 %v2308_v35, %v674_v31  ;;  %v2898_v56 = vmul.f32 %v2313_v36, %v674_v31 }
 0x131   : > { %v1194_v12 = vmul.f32 %v2330_v41, %v674_v31  ;;  %v1261_v52 = vmul.f32 %v2365_v61, %v674_v31  ;;  %v1401_v2 = vmul.f32 %v2338_v46, %v674_v31  ;;  %v1468_v42 = vmul.f32 %v2376_v4, %v674_v31 }
 0x132   : > { %v2903_v25 = vadd.f32 %v887_v47, %v2708_v39  ;;  %v1019_v26 = vadd.f32 %v987_v49, %v2715_v16  ;;  %v1529_v11 = vrot.slane %v1484_v22, 1  ;;  %v870_v63 = vmul.f32 %v2325_v40, %v589_v29  ;;  %v3921_v22 = vld [vmem:[#allocation38_spill] sm:$0xff] }
 0x133   : > { %v2909_v33 = vadd.f32 %v1194_v12, %v2722_v57  ;;  %v1293_v14 = vadd.f32 %v1261_v52, %v2725_v24  ;;  %v2914_v5 = vmul.f32 %v2320_v38, %v674_v31  ;;  %v2917_v39 = vadd.f32 %v1401_v2, %v2732_v1  ;;  %v3922_v52 = vld [vmem:[#allocation39_spill] sm:$0xff] }
 0x134   : > { %v2920_v16 = vadd.f32 %v1468_v42, %v2735_v59  ;;  %v970_v50 = vmul.f32 %v2350_v54, %v589_v29  ;;  %v2924_v60 = vmul.f32 %v2308_v35, %v589_v29  ;;  %v2927_v57 = vadd.f32 %v870_v63, %v2750_v53  ;;  %v3923_v63 = vld [vmem:[#allocation40_spill] sm:$0xff] }
 0x135   : > { %v1177_v24 = vmul.f32 %v2330_v41, %v589_v29  ;;  %v1244_v8 = vmul.f32 %v2365_v61, %v589_v29  ;;  %v1056_v45 = vrot.slane %v1019_v26, 7  ;;  %v2933_v1 = vmul.f32 %v2313_v36, %v589_v29 }
 0x136   : > { %v1002_v9 = vadd.f32 %v970_v50, %v2753_v20  ;;  %v1384_v59 = vmul.f32 %v2338_v46, %v589_v29  ;;  %v1537_v58 = vrot.slane %v2920_v16, 1  ;;  %v1451_v31 = vmul.f32 %v2376_v4, %v589_v29  ;;  %v3924_v50 = vld [vmem:[#allocation41_spill] sm:$0xff] }
 0x137   : > { %v2938_v15 = vadd.f32 %v1177_v24, %v2762_v7  ;;  %v1276_v53 = vadd.f32 %v1244_v8, %v2765_v32  ;;  %v886_v20 = vmul.f32 %v2325_v40, %v2880_v19  ;;  %v986_v49 = vmul.f32 %v2350_v54, %v2880_v19 }
 0x138   : > { %v1032_v6 = vrot.slane %v1002_v9, 7  ;;  %v2943_v47 = vadd.f32 %v1384_v59, %v3921_v22  ;;  %v2950_v12 = vmul.f32 %v2320_v38, %v589_v29  ;;  %v1483_v7 = vadd.f32 %v1451_v31, %v3922_v52 }
 0x139   : > { %v1193_v32 = vmul.f32 %v2330_v41, %v2880_v19  ;;  %v1260_v26 = vmul.f32 %v2365_v61, %v2880_v19  ;;  %v2962_v16 = vadd.f32 %v886_v20, %v3923_v63  ;;  %v1018_v29 = vadd.f32 %v986_v49, %v3924_v50 }
 0x13a   : > { %v1065_v2 = vsel %vm1062_vm2, %v1032_v6, %v1048_v3  ;;  %v1081_v42 = vsel %vm1062_vm2, %v1048_v3, %v1032_v6  ;;  %v1513_v9 = vrot.slane %v1483_v7, 1  ;;  %v2972_v22 = vmul.f32 %v2308_v35, %v2880_v19 }
 0x13b   : > { %v1101_v24 = vsel %vm1095_vm3, %v1081_v42, 0.0  ;;  %v1309_v8 = vadd.f32 %v1277_v44, %v1065_v2  ;;  %v2968_v59 = vadd.f32 %v1193_v32, %v2831_v10  ;;  %v1040_v52 = vrot.slane %v1018_v29, 7 }
 0x13c   : > { %v1308_v31 = vadd.f32 %v1276_v53, %v1101_v24  ;;  %v1292_v3 = vadd.f32 %v1260_v26, %v2802_v13  ;;  %v1546_v6 = vsel %vm1543_vm4, %v1513_v9, %v1529_v11  ;;  %v1562_v20 = vsel %vm1543_vm4, %v1529_v11, %v1513_v9 }
 0x13d   : > { %v1400_v44 = vmul.f32 %v2338_v46, %v2880_v19  ;;  %v1467_v10 = vmul.f32 %v2376_v4, %v2880_v19  ;;  %v1583_v53 = vsel %vm1577_vm5, %v1562_v20, 0.0  ;;  %v1073_v13 = vsel %vm1062_vm2, %v1040_v52, %v1056_v45 }
 0x13e   : > { %v1614_v49 = vadd.f32 %v1546_v6, %v1308_v31  ;;  %v1089_v7 = vsel %vm1062_vm2, %v1056_v45, %v1040_v52  ;;  %v1615_v32 = vadd.f32 %v1583_v53, %v1309_v8  ;;  %v1325_v26 = vadd.f32 %v1293_v14, %v1073_v13 }
 0x13f   : > { %v1117_v11 = vsel %vm1095_vm3, %v1089_v7, 0.0  ;;  %v2992_v2 = vadd.f32 %v1400_v44, %v2835_v17  ;;  %v2997_v63 = vmul.f32 %v2313_v36, %v2880_v19  ;;  %v1499_v29 = vadd.f32 %v1467_v10, %v2824_v0 }
 0x140   : > { %v1653_v42 = vadd.f32 %v2645_v23, %v1614_v49  ;;  %v1324_v50 = vadd.f32 %v1292_v3, %v1117_v11  ;;  %v1654_v45 = vadd.f32 %v2645_v23, %v1615_v32  ;;  %v3003_v24 = vmul.f32 %v2320_v38, %v2880_v19 }
 0x141   : > { %v873_v14 = vmul.f32 %v2325_v40, %v2887_v62  ;;  %v973_v17 = vmul.f32 %v2350_v54, %v2887_v62  ;;  %v1521_v8 = vrot.slane %v1499_v29, 1  ;;  %v3012_v9 = vmul.f32 %v2308_v35, %v2887_v62 }
 0x142   : > { %1685 = vst [vmem:[%s2688_s14 + $0x20] sm:$0xff] %v1653_v42  ;;  %v1180_v0 = vmul.f32 %v2330_v41, %v2887_v62  ;;  %v1247_v31 = vmul.f32 %v2365_v61, %v2887_v62  ;;  %1686 = vst [vmem:[%s2688_s14 + $0x28] sm:$0xff] %v1654_v45  ;;  %v1387_v3 = vmul.f32 %v2338_v46, %v2887_v62 }
 0x143   : > { %v3020_v19 = vadd.f32 %v873_v14, %v2842_v28  ;;  %v3023_v52 = vadd.f32 %v973_v17, %v2852_v18  ;;  %v1454_v6 = vmul.f32 %v2376_v4, %v2887_v62  ;;  %v1554_v20 = vsel %vm1543_vm4, %v1521_v8, %v1537_v58 }
 0x144   : > { %v1570_v44 = vsel %vm1543_vm4, %v1537_v58, %v1521_v8  ;;  %v3034_v10 = vadd.f32 %v1180_v0, %v2862_v21  ;;  %v1279_v28 = vadd.f32 %v1247_v31, %v2858_v27  ;;  %v1630_v53 = vadd.f32 %v1554_v20, %v1324_v50  ;;  %v3925_v31 = vld [vmem:[#allocation18_spill] sm:$0xff] }
 0x145   : > { %v1599_v18 = vsel %vm1577_vm5, %v1570_v44, 0.0  ;;  %v3041_v49 = vmul.f32 %v2313_v36, %v2887_v62  ;;  %v3044_v13 = vadd.f32 %v1387_v3, %v2870_v43  ;;  %v3048_v58 = vmul.f32 %v2320_v38, %v2887_v62 }
 0x146   : > { %v1631_v7 = vadd.f32 %v1599_v18, %v1325_v26  ;;  %v3051_v27 = vadd.f32 %v1454_v6, %v2865_v30  ;;  %v889_v21 = vmul.f32 %v2325_v40, %v2891_v48  ;;  %v1669_v32 = vadd.f32 %v2645_v23, %v1630_v53  ;;  %v3926_v6 = vld [vmem:[#allocation19_spill] sm:$0xff]  ;;  %v3927_v53 = vld [vmem:[#allocation22_spill] sm:$0xff] }
 0x147   : > { %v1049_v11 = vrot.slane %v3023_v52, 7  ;;  %v989_v43 = vmul.f32 %v2350_v54, %v2891_v48  ;;  %v1196_v26 = vmul.f32 %v2330_v41, %v2891_v48  ;;  %v3064_v42 = vmul.f32 %v2308_v35, %v2891_v48 }
 0x148   : > { %v1670_v62 = vadd.f32 %v2645_v23, %v1631_v7  ;;  %v3067_v30 = vadd.f32 %v889_v21, %v2895_v55  ;;  %v1263_v50 = vmul.f32 %v2365_v61, %v2891_v48  ;;  %1701 = vst [vmem:[%s2688_s14 + $0xa0] sm:$0xff] %v1669_v32  ;;  %v3075_v45 = vmul.f32 %v2313_v36, %v2891_v48  ;;  %v3928_v21 = vld [vmem:[#allocation23_spill] sm:$0xff] }
 0x149   : > { %v1021_v29 = vadd.f32 %v989_v43, %v2903_v25  ;;  %v3078_v14 = vadd.f32 %v1196_v26, %v2898_v56  ;;  %v1403_v17 = vmul.f32 %v2338_v46, %v2891_v48  ;;  %v1530_v55 = vrot.slane %v3051_v27, 1 }
 0x14a   : > { %1702 = vst [vmem:[%s2688_s14 + $0xa8] sm:$0xff] %v1670_v62  ;;  %v1295_v8 = vadd.f32 %v1263_v50, %v2909_v33  ;;  %v1470_v0 = vmul.f32 %v2376_v4, %v2891_v48  ;;  %v599_v25 = vadd.f32 %v2303_v34, %v3925_v31  ;;  %v3091_v3 = vmul.f32 %v2320_v38, %v2891_v48 }
 0x14b   : > { %v1057_v52 = vrot.slane %v1021_v29, 7  ;;  %v3094_v56 = vadd.f32 %v1403_v17, %v2914_v5  ;;  %v679_v20 = vadd.f32 %v2303_v34, %v3926_v6  ;;  %v3105_v7 = vadd.f32 %v3927_v53, %v2303_v34 }
 0x14c   : > { %v3099_v44 = vadd.f32 %v1470_v0, %v2917_v39  ;;  %v872_v33 = vmul.f32 %v2325_v40, %v599_v25  ;;  %v972_v18 = vmul.f32 %v2350_v54, %v599_v25  ;;  %v3108_v48 = vmul.f32 %v2308_v35, %v599_v25 }
 0x14d   : > { %v1179_v5 = vmul.f32 %v2330_v41, %v599_v25  ;;  %v1246_v27 = vmul.f32 %v2365_v61, %v599_v25  ;;  %v3114_v32 = vadd.f32 %v3928_v21, %v2303_v34  ;;  %v3121_v26 = vmul.f32 %v2313_v36, %v599_v25 }
 0x14e   : > { %v3117_v39 = vadd.f32 %v872_v33, %v2924_v60  ;;  %v1004_v43 = vadd.f32 %v972_v18, %v2927_v57  ;;  %v1386_v62 = vmul.f32 %v2338_v46, %v599_v25  ;;  %v3129_v17 = vmul.f32 %v2320_v38, %v599_v25 }
 0x14f   : > { %v3125_v50 = vadd.f32 %v1179_v5, %v2933_v1  ;;  %v1278_v29 = vadd.f32 %v1246_v27, %v2938_v15  ;;  %v1453_v0 = vmul.f32 %v2376_v4, %v599_v25  ;;  %v888_v57 = vmul.f32 %v2325_v40, %v679_v20 }
 0x150   : > { %v1033_v31 = vrot.slane %v1004_v43, 7  ;;  %v3133_v60 = vadd.f32 %v1386_v62, %v2950_v12  ;;  %v988_v6 = vmul.f32 %v2350_v54, %v679_v20  ;;  %v1538_v33 = vrot.slane %v3099_v44, 1 }
 0x151   : > { %v1485_v1 = vadd.f32 %v1453_v0, %v2943_v47  ;;  %v1195_v18 = vmul.f32 %v2330_v41, %v679_v20  ;;  %v1262_v15 = vmul.f32 %v2365_v61, %v679_v20  ;;  %v3146_v12 = vadd.f32 %v888_v57, %v2972_v22 }
 0x152   : > { %v1066_v53 = vsel %vm1062_vm2, %v1033_v31, %v1049_v11  ;;  %v1082_v25 = vsel %vm1062_vm2, %v1049_v11, %v1033_v31  ;;  %v1020_v5 = vadd.f32 %v988_v6, %v2962_v16  ;;  %v3155_v62 = vmul.f32 %v2308_v35, %v679_v20 }
 0x153   : > { %v1103_v44 = vsel %vm1095_vm3, %v1082_v25, 0.0  ;;  %v1311_v27 = vadd.f32 %v1279_v28, %v1066_v53  ;;  %v1514_v47 = vrot.slane %v1485_v1, 1  ;;  %v3152_v21 = vadd.f32 %v1195_v18, %v2997_v63 }
 0x154   : > { %v1310_v43 = vadd.f32 %v1278_v29, %v1103_v44  ;;  %v1041_v0 = vrot.slane %v1020_v5, 7  ;;  %v1294_v11 = vadd.f32 %v1262_v15, %v2968_v59  ;;  %v1402_v31 = vmul.f32 %v2338_v46, %v679_v20 }
 0x155   : > { %v1547_v22 = vsel %vm1543_vm4, %v1514_v47, %v1530_v55  ;;  %v1563_v16 = vsel %vm1543_vm4, %v1530_v55, %v1514_v47  ;;  %v1469_v28 = vmul.f32 %v2376_v4, %v679_v20  ;;  %v3177_v53 = vmul.f32 %v2313_v36, %v679_v20 }
 0x156   : > { %v1585_v63 = vsel %vm1577_vm5, %v1563_v16, 0.0  ;;  %v1616_v29 = vadd.f32 %v1547_v22, %v1310_v43  ;;  %v1074_v57 = vsel %vm1062_vm2, %v1041_v0, %v1057_v52  ;;  %v1090_v59 = vsel %vm1062_vm2, %v1057_v52, %v1041_v0 }
 0x157   : > { %v1617_v6 = vadd.f32 %v1585_v63, %v1311_v27  ;;  %v1119_v1 = vsel %vm1095_vm3, %v1090_v59, 0.0  ;;  %v1327_v55 = vadd.f32 %v1295_v8, %v1074_v57  ;;  %v3173_v18 = vadd.f32 %v1402_v31, %v3003_v24 }
 0x158   : > { %v1655_v15 = vadd.f32 %v2645_v23, %v1616_v29  ;;  %v1326_v25 = vadd.f32 %v1294_v11, %v1119_v1  ;;  %v1501_v5 = vadd.f32 %v1469_v28, %v2992_v2  ;;  %v3182_v52 = vmul.f32 %v2320_v38, %v679_v20 }
 0x159   : > { %v1656_v44 = vadd.f32 %v2645_v23, %v1617_v6  ;;  %v875_v27 = vmul.f32 %v2325_v40, %v3105_v7  ;;  %v975_v24 = vmul.f32 %v2350_v54, %v3105_v7  ;;  %v3191_v47 = vmul.f32 %v2308_v35, %v3105_v7 }
 0x15a   : > { %1687 = vst [vmem:[%s2688_s14 + $0x30] sm:$0xff] %v1655_v15  ;;  %v1522_v8 = vrot.slane %v1501_v5, 1  ;;  %v1182_v2 = vmul.f32 %v2330_v41, %v3105_v7  ;;  %v1249_v43 = vmul.f32 %v2365_v61, %v3105_v7  ;;  %v1389_v11 = vmul.f32 %v2338_v46, %v3105_v7 }
 0x15b   : > { %1688 = vst [vmem:[%s2688_s14 + $0x38] sm:$0xff] %v1656_v44  ;;  %v3199_v20 = vadd.f32 %v875_v27, %v3012_v9  ;;  %v3202_v0 = vadd.f32 %v975_v24, %v3020_v19  ;;  %v1456_v22 = vmul.f32 %v2376_v4, %v3105_v7  ;;  %v3222_v29 = vmul.f32 %v2313_v36, %v3105_v7 }
 0x15c   : > { %v1555_v16 = vsel %vm1543_vm4, %v1522_v8, %v1538_v33  ;;  %v1571_v31 = vsel %vm1543_vm4, %v1538_v33, %v1522_v8  ;;  %v3213_v28 = vadd.f32 %v1182_v2, %v3041_v49  ;;  %v3216_v9 = vadd.f32 %v1249_v43, %v3034_v10  ;;  %v3929_v2 = vld [vmem:[#allocation25_spill] sm:$0xff]  ;;  %v3930_v43 = vld [vmem:[#allocation26_spill] sm:$0xff] }
 0x15d   : > { %v1601_v19 = vsel %vm1577_vm5, %v1571_v31, 0.0  ;;  %v1632_v63 = vadd.f32 %v1555_v16, %v1326_v25  ;;  %v3225_v57 = vadd.f32 %v1389_v11, %v3048_v58  ;;  %v3228_v33 = vadd.f32 %v1456_v22, %v3044_v13  ;;  %v3932_v22 = vld [vmem:[#allocation28_spill] sm:$0xff] }
 0x15e   : > { %v1633_v59 = vadd.f32 %v1601_v19, %v1327_v55  ;;  %v891_v10 = vmul.f32 %v2325_v40, %v3114_v32  ;;  %v991_v49 = vmul.f32 %v2350_v54, %v3114_v32  ;;  %v1198_v1 = vmul.f32 %v2330_v41, %v3114_v32  ;;  %v3933_v19 = vld [vmem:[#allocation29_spill] sm:$0xff] }
 0x15f   : > { %v1671_v6 = vadd.f32 %v2645_v23, %v1632_v63  ;;  %v1265_v58 = vmul.f32 %v2365_v61, %v3114_v32  ;;  %v1405_v55 = vmul.f32 %v2338_v46, %v3114_v32  ;;  %v3244_v15 = vmul.f32 %v2320_v38, %v3105_v7  ;;  %v3934_v63 = vld [vmem:[#allocation30_spill] sm:$0xff] }
 0x160   : > { %v1672_v13 = vadd.f32 %v2645_v23, %v1633_v59  ;;  %v3247_v25 = vadd.f32 %v891_v10, %v3064_v42  ;;  %v1023_v5 = vadd.f32 %v991_v49, %v3067_v30  ;;  %v3252_v44 = vadd.f32 %v1198_v1, %v3075_v45 }
 0x161   : > { %1703 = vst [vmem:[%s2688_s14 + $0xb0] sm:$0xff] %v1671_v6  ;;  %v1297_v27 = vadd.f32 %v1265_v58, %v3078_v14  ;;  %v3256_v24 = vadd.f32 %v1405_v55, %v3091_v3  ;;  %v1472_v8 = vmul.f32 %v2376_v4, %v3114_v32  ;;  %v1050_v38 = vrot.slane %v3202_v0, 7  ;;  %v3931_v3 = vld [vmem:[#allocation27_spill] sm:$0xff] }
 0x162   : > { %1704 = vst [vmem:[%s2688_s14 + $0xb8] sm:$0xff] %v1672_v13  ;;  %v1531_v42 = vrot.slane %v3228_v33, 1  ;;  %v1058_v7 = vrot.slane %v1023_v5, 7  ;;  %v609_v30 = vadd.f32 %v2303_v34, %v3929_v2  ;;  %v3270_v14 = vadd.f32 %v2303_v34, %v3930_v43 }
 0x163   : > { %v3266_v45 = vadd.f32 %v1472_v8, %v3094_v56  ;;  %v3274_v11 = vadd.f32 %v3931_v3, %v2303_v34  ;;  %v3278_v0 = vadd.f32 %v3932_v22, %v2303_v34  ;;  %v3284_v56 = vadd.f32 %v2303_v34, %v3933_v19 }
 0x164   : > { %v874_v16 = vmul.f32 %v2325_v40, %v609_v30  ;;  %v974_v31 = vmul.f32 %v2350_v54, %v609_v30  ;;  %v3288_v59 = vadd.f32 %v2303_v34, %v3934_v63  ;;  %v3291_v33 = vmul.f32 %v2308_v35, %v609_v30 }
 0x165   : > { %v3294_v10 = vmul.f32 %v2313_v36, %v609_v30  ;;  %v1181_v49 = vmul.f32 %v2330_v41, %v609_v30  ;;  %v1248_v40 = vmul.f32 %v2365_v61, %v609_v30  ;;  %v1388_v58 = vmul.f32 %v2338_v46, %v609_v30  ;;  %v3311_v36 = vld [vmem:[%s3880_s5 + $0x3] ss:$0 sm:$0xff] }
 0x166   : > { %v3299_v6 = vadd.f32 %v874_v16, %v3108_v48  ;;  %v1006_v1 = vadd.f32 %v974_v31, %v3117_v39  ;;  %v1455_v34 = vmul.f32 %v2376_v4, %v609_v30  ;;  %v890_v41 = vmul.f32 %v3311_v36, %v3270_v14 }
 0x167   : > { %v3305_v55 = vadd.f32 %v1181_v49, %v3121_v26  ;;  %v1280_v35 = vadd.f32 %v1248_v40, %v3125_v50  ;;  %v990_v48 = vmul.f32 %v2350_v54, %v3270_v14  ;;  %v1539_v46 = vrot.slane %v3266_v45, 1  ;;  %v3325_v50 = vld [vmem:[%s3880_s5 + $0x2] ss:$0 sm:$0xff]  ;;  %v3334_v54 = vld [vmem:[%s3880_s5 + $0x4] ss:$0 sm:$0xff] }
 0x168   : > { %v1034_v39 = vrot.slane %v1006_v1, 7  ;;  %v3319_v4 = vadd.f32 %v1388_v58, %v3129_v17  ;;  %v1487_v26 = vadd.f32 %v1455_v34, %v3133_v60  ;;  %v3328_v13 = vmul.f32 %v3325_v50, %v609_v30  ;;  %v3371_v49 = vld [vmem:[%s3880_s5 + $0x8] ss:$0 sm:$0xff] }
 0x169   : > { %v1022_v5 = vadd.f32 %v990_v48, %v3146_v12  ;;  %v1197_v17 = vmul.f32 %v3334_v54, %v3270_v14  ;;  %v1264_v60 = vmul.f32 %v2365_v61, %v3270_v14  ;;  %v3345_v12 = vadd.f32 %v890_v41, %v3155_v62  ;;  %v3353_v61 = vld [vmem:[%s3880_s5 + $0x5] ss:$0 sm:$0xff] }
 0x16a   : > { %v1067_v8 = vsel %vm1062_vm2, %v1034_v39, %v1050_v38  ;;  %v1083_v2 = vsel %vm1062_vm2, %v1050_v38, %v1034_v39  ;;  %v1515_v30 = vrot.slane %v1487_v26, 1  ;;  %v1404_v22 = vmul.f32 %v3353_v61, %v3270_v14 }
 0x16b   : > { %v1105_v45 = vsel %vm1095_vm3, %v1083_v2, 0.0  ;;  %v1313_v43 = vadd.f32 %v3216_v9, %v1067_v8  ;;  %v1042_v3 = vrot.slane %v1022_v5, 7  ;;  %v1296_v31 = vadd.f32 %v1264_v60, %v3152_v21  ;;  %v3412_v8 = vld [vmem:[%s3880_s5] ss:$0 sm:$0xff] }
 0x16c   : > { %v1312_v16 = vadd.f32 %v1280_v35, %v1105_v45  ;;  %v1548_v38 = vsel %vm1543_vm4, %v1515_v30, %v1531_v42  ;;  %v1564_v62 = vsel %vm1543_vm4, %v1531_v42, %v1515_v30  ;;  %v1471_v40 = vmul.f32 %v3371_v49, %v3270_v14 }
 0x16d   : > { %v1587_v9 = vsel %vm1577_vm5, %v1564_v62, 0.0  ;;  %v1075_v19 = vsel %vm1062_vm2, %v1042_v3, %v1058_v7  ;;  %v1091_v63 = vsel %vm1062_vm2, %v1058_v7, %v1042_v3  ;;  %v3378_v34 = vadd.f32 %v1197_v17, %v3177_v53  ;;  %v3436_v62 = vld [vmem:[%s3880_s5 + $0x1] ss:$0 sm:$0xff] }
 0x16e   : > { %v1618_v42 = vadd.f32 %v1548_v38, %v1312_v16  ;;  %v1619_v1 = vadd.f32 %v1587_v9, %v1313_v43  ;;  %v1121_v21 = vsel %vm1095_vm3, %v1091_v63, 0.0  ;;  %v1329_v58 = vadd.f32 %v1297_v27, %v1075_v19  ;;  %v3391_v27 = vld [vmem:[%s3880_s5 + $0x6] ss:$0 sm:$0xff] }
 0x16f   : > { %v1328_v7 = vadd.f32 %v1296_v31, %v1121_v21  ;;  %v1503_v35 = vadd.f32 %v1471_v40, %v3173_v18  ;;  %v877_v41 = vmul.f32 %v3311_v36, %v3274_v11  ;;  %v3386_v26 = vadd.f32 %v1404_v22, %v3182_v52  ;;  %v3403_v52 = vld [vmem:[%s3880_s5 + $0x7] ss:$0 sm:$0xff] }
 0x170   : > { %v1657_v48 = vadd.f32 %v2645_v23, %v1618_v42  ;;  %v1658_v39 = vadd.f32 %v2645_v23, %v1619_v1  ;;  %v977_v53 = vmul.f32 %v3391_v27, %v3274_v11  ;;  %v1184_v17 = vmul.f32 %v3334_v54, %v3274_v11 }
 0x171   : > { %v1523_v5 = vrot.slane %v1503_v35, 1  ;;  %v3396_v18 = vadd.f32 %v877_v41, %v3191_v47  ;;  %v1251_v60 = vmul.f32 %v3403_v52, %v3274_v11  ;;  %v3416_v47 = vmul.f32 %v3412_v8, %v3274_v11 }
 0x172   : > { %1689 = vst [vmem:[%s2688_s14 + $0x40] sm:$0xff] %v1657_v48  ;;  %1690 = vst [vmem:[%s2688_s14 + $0x48] sm:$0xff] %v1658_v39  ;;  %v1009_v2 = vadd.f32 %v977_v53, %v3199_v20  ;;  %v1391_v30 = vmul.f32 %v3353_v61, %v3274_v11  ;;  %v1458_v45 = vmul.f32 %v3371_v49, %v3274_v11 }
 0x173   : > { %v1556_v43 = vsel %vm1543_vm4, %v1523_v5, %v1539_v46  ;;  %v1572_v3 = vsel %vm1543_vm4, %v1539_v46, %v1523_v5  ;;  %v3428_v22 = vadd.f32 %v1184_v17, %v3222_v29  ;;  %v1283_v16 = vadd.f32 %v1251_v60, %v3213_v28 }
 0x174   : > { %v1603_v20 = vsel %vm1577_vm5, %v1572_v3, 0.0  ;;  %v1634_v38 = vadd.f32 %v1556_v43, %v1328_v7  ;;  %v3440_v31 = vmul.f32 %v3436_v62, %v3274_v11  ;;  %v3443_v46 = vadd.f32 %v1391_v30, %v3244_v15 }
 0x175   : > { %v1635_v29 = vadd.f32 %v1603_v20, %v1329_v58  ;;  %v1490_v28 = vadd.f32 %v1458_v45, %v3225_v57  ;;  %v993_v9 = vmul.f32 %v3391_v27, %v3278_v0  ;;  %v1267_v19 = vmul.f32 %v3403_v52, %v3278_v0 }
 0x176   : > { %v1673_v63 = vadd.f32 %v2645_v23, %v1634_v38  ;;  %v3453_v40 = vmul.f32 %v3325_v50, %v3274_v11  ;;  %v1474_v15 = vmul.f32 %v3371_v49, %v3278_v0  ;;  %v876_v42 = vmul.f32 %v3311_v36, %v3284_v56  ;;  %v3506_v38 = vld [vmem:[%s3879_s4] ss:$0 sm:$0xff] }
 0x177   : > { %v1674_v57 = vadd.f32 %v2645_v23, %v1635_v29  ;;  %v1051_v1 = vrot.slane %v1009_v2, 7  ;;  %v1025_v21 = vadd.f32 %v993_v9, %v3247_v25  ;;  %v1299_v58 = vadd.f32 %v1267_v19, %v3252_v44  ;;  %v3935_v29 = vld [vmem:[#allocation32_spill] sm:$0xff] }
 0x178   : > { %1705 = vst [vmem:[%s2688_s14 + $0xc0] sm:$0xff] %v1673_v63  ;;  %v1506_v7 = vadd.f32 %v1474_v15, %v3256_v24  ;;  %v3466_v11 = vmul.f32 %v3412_v8, %v3284_v56  ;;  %v3469_v35 = vadd.f32 %v876_v42, %v3291_v33  ;;  %v976_v41 = vmul.f32 %v3391_v27, %v3284_v56 }
 0x179   : > { %1706 = vst [vmem:[%s2688_s14 + $0xc8] sm:$0xff] %v1674_v57  ;;  %v1532_v48 = vrot.slane %v1490_v28, 1  ;;  %v3476_v25 = vmul.f32 %v3436_v62, %v3284_v56  ;;  %v1183_v44 = vmul.f32 %v3334_v54, %v3284_v56  ;;  %v1250_v24 = vmul.f32 %v3403_v52, %v3284_v56 }
 0x17a   : > { %v1059_v39 = vrot.slane %v1025_v21, 7  ;;  %v1008_v53 = vadd.f32 %v976_v41, %v3299_v6  ;;  %v1390_v33 = vmul.f32 %v3353_v61, %v3284_v56  ;;  %v1457_v5 = vmul.f32 %v3371_v49, %v3284_v56 }
 0x17b   : > { %v3488_v17 = vadd.f32 %v1183_v44, %v3294_v10  ;;  %v1282_v60 = vadd.f32 %v1250_v24, %v3305_v55  ;;  %v992_v2 = vmul.f32 %v3391_v27, %v3288_v59  ;;  %v1266_v30 = vmul.f32 %v3403_v52, %v3288_v59 }
 0x17c   : > { %v1035_v45 = vrot.slane %v1008_v53, 7  ;;  %v3496_v6 = vadd.f32 %v1390_v33, %v3328_v13  ;;  %v1489_v43 = vadd.f32 %v1457_v5, %v3319_v4  ;;  %v1473_v3 = vmul.f32 %v3371_v49, %v3288_v59 }
 0x17d   : > { %v1540_v20 = vrot.slane %v1506_v7, 1  ;;  %v1024_v10 = vadd.f32 %v992_v2, %v3345_v12  ;;  %v1298_v55 = vadd.f32 %v1266_v30, %v3378_v34  ;;  %v634_v28 = vadd.f32 %v3506_v38, %v3935_v29  ;;  %v3937_v29 = vld [vmem:[#allocation7_spill] sm:$0xff] }
 0x17e   : > { %v1068_v13 = vsel %vm1062_vm2, %v1035_v45, %v1051_v1  ;;  %v1084_v4 = vsel %vm1062_vm2, %v1051_v1, %v1035_v45  ;;  %v1516_v9 = vrot.slane %v1489_v43, 1  ;;  %v1505_v19 = vadd.f32 %v1473_v3, %v3386_v26  ;;  %v3936_v43 = vld [vmem:[#allocation6_spill] sm:$0xff] }
 0x17f   : > { %v1107_v12 = vsel %vm1095_vm3, %v1084_v4, 0.0  ;;  %v1315_v34 = vadd.f32 %v1283_v16, %v1068_v13  ;;  %v1043_v63 = vrot.slane %v1024_v10, 7  ;;  %v812_v15 = vmul.f32 %v3412_v8, %v634_v28 }
 0x180   : > { %v1314_v42 = vadd.f32 %v1282_v60, %v1107_v12  ;;  %v1549_v57 = vsel %vm1543_vm4, %v1516_v9, %v1532_v48  ;;  %v1565_v21 = vsel %vm1543_vm4, %v1532_v48, %v1516_v9  ;;  %v1524_v7 = vrot.slane %v1505_v19, 1 }
 0x181   : > { %v1589_v1 = vsel %vm1577_vm5, %v1565_v21, 0.0  ;;  %v1076_v26 = vsel %vm1062_vm2, %v1043_v63, %v1059_v39  ;;  %v1092_v16 = vsel %vm1062_vm2, %v1059_v39, %v1043_v63  ;;  %v879_v41 = vmul.f32 %v3311_v36, %v634_v28 }
 0x182   : > { %v1620_v44 = vadd.f32 %v1549_v57, %v1314_v42  ;;  %v1621_v24 = vadd.f32 %v1589_v1, %v1315_v34  ;;  %v1123_v53 = vsel %vm1095_vm3, %v1092_v16, 0.0  ;;  %v1331_v48 = vadd.f32 %v1299_v58, %v1076_v26  ;;  %v3939_v57 = vld [vmem:[#allocation8_spill] sm:$0xff]  ;;  %v3940_v1 = vld [vmem:[#allocation33_spill] sm:$0xff] }
 0x183   : > { %v1330_v33 = vadd.f32 %v1298_v55, %v1123_v53  ;;  %v1557_v5 = vsel %vm1543_vm4, %v1524_v7, %v1540_v20  ;;  %v1573_v60 = vsel %vm1543_vm4, %v1540_v20, %v1524_v7  ;;  %v911_v2 = vadd.f32 %v879_v41, %v3416_v47  ;;  %v3938_v47 = vld [vmem:[#allocation20_spill] sm:$0xff]  ;;  %v3941_v41 = vld [vmem:[#allocation9_spill] sm:$0xff] }
 0x184   : > { %v1659_v39 = vadd.f32 %v2645_v23, %v1620_v44  ;;  %v1660_v30 = vadd.f32 %v2645_v23, %v1621_v24  ;;  %v1605_v45 = vsel %vm1577_vm5, %v1573_v60, 0.0  ;;  %v913_v3 = vadd.f32 %v3936_v43, %v812_v15  ;;  %v3944_v43 = vld [vmem:[#allocation11_spill] sm:$0xff] }
 0x185   : > { %v1636_v10 = vadd.f32 %v1557_v5, %v1330_v33  ;;  %v1637_v58 = vadd.f32 %v1605_v45, %v1331_v48  ;;  %v979_v55 = vmul.f32 %v3391_v27, %v634_v28  ;;  %v3543_v13 = vadd.f32 %v3937_v29, %v911_v2  ;;  %v3943_v33 = vld [vmem:[#allocation10_spill] sm:$0xff] }
 0x186   : > { %1691 = vst [vmem:[%s2688_s14 + $0x50] sm:$0xff] %v1659_v39  ;;  %1692 = vst [vmem:[%s2688_s14 + $0x58] sm:$0xff] %v1660_v30  ;;  %v3548_v20 = vadd.f32 %v3938_v47, %v913_v3  ;;  %v1151_v4 = vmul.f32 %v3436_v62, %v634_v28  ;;  %v1186_v9 = vmul.f32 %v3334_v54, %v634_v28  ;;  %v3596_v45 = vmul.f32 0.0, %v3391_v27  ;;  %v3945_v3 = vld [vmem:[#allocation24_spill] sm:$0xff] }
 0x187   : > { %v1253_v19 = vmul.f32 %v3403_v52, %v634_v28  ;;  %v3555_v12 = vmul.f32 %v3325_v50, %v3284_v56  ;;  %v1675_v34 = vadd.f32 %v2645_v23, %v1636_v10  ;;  %v1676_v63 = vadd.f32 %v2645_v23, %v1637_v58 }
 0x188   : > { %v3560_v15 = vadd.f32 %v979_v55, %v3396_v18  ;;  %v1218_v42 = vadd.f32 %v1186_v9, %v3440_v31  ;;  %v1220_v21 = vadd.f32 %v3939_v57, %v1151_v4  ;;  %v714_v26 = vadd.f32 %v3506_v38, %v3940_v1 }
 0x189   : > { %v3565_v7 = vadd.f32 %v1253_v19, %v3428_v22  ;;  %1707 = vst [vmem:[%s2688_s14 + $0xd0] sm:$0xff] %v1675_v34  ;;  %1708 = vst [vmem:[%s2688_s14 + $0xd8] sm:$0xff] %v1676_v63  ;;  %v1053_v56 = vrot.slane %v3543_v13, 7  ;;  %v1358_v16 = vmul.f32 %v3325_v50, %v634_v28  ;;  %v1393_v23 = vmul.f32 %v3353_v61, %v634_v28  ;;  %v3942_v22 = vld [vmem:[#allocation21_spill] sm:$0xff] }
 0x18a   : > { %v1460_v18 = vmul.f32 %v3371_v49, %v634_v28  ;;  %v1054_v31 = vrot.slane %v3548_v20, 7  ;;  %v3577_v44 = vadd.f32 %v3941_v41, %v1218_v42  ;;  %v3580_v24 = vadd.f32 %v3942_v22, %v1220_v21  ;;  %v3951_v41 = vld [vmem:[#allocation31_spill] sm:$0xff] }
 0x18b   : > { %v824_v53 = vmul.f32 %v3412_v8, %v3114_v32  ;;  %v1425_v48 = vadd.f32 %v1393_v23, %v3453_v40  ;;  %v1427_v5 = vadd.f32 %v3943_v33, %v1358_v16  ;;  %v893_v28 = vmul.f32 %v3311_v36, %v3278_v0 }
 0x18c   : > { %v3587_v60 = vadd.f32 %v1460_v18, %v3443_v46  ;;  %v826_v2 = vmul.f32 %v3412_v8, %v3278_v0  ;;  %v895_v39 = vmul.f32 %v3311_v36, %v714_v26  ;;  %v995_v30 = vmul.f32 %v3391_v27, %v714_v26 }
 0x18d   : > { %v3599_v40 = vadd.f32 %v3944_v43, %v1425_v48  ;;  %v3602_v10 = vadd.f32 %v3945_v3, %v1427_v5  ;;  %v925_v46 = vadd.f32 %v893_v28, %v824_v53  ;;  %v1163_v58 = vmul.f32 %v3436_v62, %v3114_v32  ;;  %v3947_v3 = vld [vmem:[#allocation37_spill] sm:$0xff] }
 0x18e   : > { %v927_v55 = vadd.f32 %v895_v39, %v826_v2  ;;  %v1165_v29 = vmul.f32 %v3436_v62, %v3278_v0  ;;  %v1200_v47 = vmul.f32 %v3334_v54, %v3278_v0  ;;  %v1202_v4 = vmul.f32 %v3334_v54, %v714_v26  ;;  %v3946_v2 = vld [vmem:[#allocation36_spill] sm:$0xff] }
 0x18f   : > { %v1052_v9 = vrot.slane %v3560_v15, 7  ;;  %v1533_v19 = vrot.slane %v3587_v60, 1  ;;  %v3613_v34 = vadd.f32 %v995_v30, %v925_v46  ;;  %v1269_v63 = vmul.f32 %v3403_v52, %v714_v26 }
 0x190   : > { %v3617_v42 = vadd.f32 %v3596_v45, %v927_v55  ;;  %v1232_v57 = vadd.f32 %v1200_v47, %v1163_v58  ;;  %v1234_v21 = vadd.f32 %v1202_v4, %v1165_v29  ;;  %v3620_v1 = vmul.f32 0.0, %v3403_v52 }
 0x191   : > { %v1534_v16 = vrot.slane %v3599_v40, 1  ;;  %v1370_v15 = vmul.f32 %v3325_v50, %v3114_v32  ;;  %v1407_v18 = vmul.f32 %v3353_v61, %v3278_v0  ;;  %v1372_v53 = vmul.f32 %v3325_v50, %v3278_v0 }
 0x192   : > { %v3629_v22 = vadd.f32 %v1269_v63, %v1232_v57  ;;  %v1409_v48 = vmul.f32 %v3353_v61, %v714_v26  ;;  %v1476_v28 = vmul.f32 %v3371_v49, %v714_v26  ;;  %v629_v32 = vadd.f32 %v3506_v38, %v3946_v2  ;;  %v3948_v57 = vld [vmem:[#allocation12_spill] sm:$0xff] }
 0x193   : > { %v1439_v5 = vadd.f32 %v1407_v18, %v1370_v15  ;;  %v3639_v39 = vadd.f32 %v3620_v1, %v1234_v21  ;;  %v3642_v43 = vmul.f32 0.0, %v3371_v49  ;;  %v3646_v0 = vadd.f32 %v3506_v38, %v3947_v3  ;;  %v3950_v3 = vld [vmem:[#allocation13_spill] sm:$0xff] }
 0x194   : > { %v1441_v30 = vadd.f32 %v1409_v48, %v1372_v53  ;;  %v811_v58 = vmul.f32 %v3412_v8, %v629_v32  ;;  %v878_v26 = vmul.f32 %v3311_v36, %v629_v32  ;;  %v978_v55 = vmul.f32 %v3391_v27, %v629_v32 }
 0x195   : > { %v3648_v46 = vadd.f32 %v1476_v28, %v1439_v5  ;;  %v1150_v29 = vmul.f32 %v3436_v62, %v629_v32  ;;  %v1185_v47 = vmul.f32 %v3334_v54, %v629_v32  ;;  %v1252_v4 = vmul.f32 %v3403_v52, %v629_v32  ;;  %v3949_v5 = vld [vmem:[#allocation14_spill] sm:$0xff] }
 0x196   : > { %v823_v63 = vmul.f32 %v3412_v8, %v3270_v14  ;;  %v910_v38 = vadd.f32 %v878_v26, %v3466_v11  ;;  %v912_v21 = vadd.f32 %v3948_v57, %v811_v58  ;;  %v1010_v15 = vadd.f32 %v978_v55, %v3469_v35  ;;  %v3952_v35 = vld [vmem:[#allocation15_spill] sm:$0xff]  ;;  %v3953_v57 = vld [vmem:[#allocation34_spill] sm:$0xff] }
 0x197   : > { %v825_v18 = vmul.f32 %v3412_v8, %v3288_v59  ;;  %v3664_v53 = vadd.f32 %v3642_v43, %v1441_v30  ;;  %v1217_v48 = vadd.f32 %v1185_v47, %v3476_v25  ;;  %v1219_v28 = vadd.f32 %v3949_v5, %v1150_v29 }
 0x198   : > { %v1284_v2 = vadd.f32 %v1252_v4, %v3488_v17  ;;  %v1012_v33 = vadd.f32 %v3950_v3, %v910_v38  ;;  %v1014_v11 = vadd.f32 %v3951_v41, %v912_v21  ;;  %v1036_v26 = vrot.slane %v1010_v15, 7  ;;  %v3954_v21 = vld [vmem:[#allocation16_spill] sm:$0xff] }
 0x199   : > { %v1357_v58 = vmul.f32 %v3325_v50, %v629_v32  ;;  %v1286_v55 = vadd.f32 %v3952_v35, %v1217_v48  ;;  %v1288_v8 = vadd.f32 %v3953_v57, %v1219_v28  ;;  %v1392_v30 = vmul.f32 %v3353_v61, %v629_v32 }
 0x19a   : > { %v1459_v23 = vmul.f32 %v3371_v49, %v629_v32  ;;  %v1037_v25 = vrot.slane %v1012_v33, 7  ;;  %v1038_v47 = vrot.slane %v1014_v11, 7  ;;  %v1069_v17 = vsel %vm1062_vm2, %v1036_v26, %v1052_v9 }
 0x19b   : > { %v1085_v29 = vsel %vm1062_vm2, %v1052_v9, %v1036_v26  ;;  %v1317_v4 = vadd.f32 %v3565_v7, %v1069_v17  ;;  %v1424_v38 = vadd.f32 %v1392_v30, %v3555_v12  ;;  %v1426_v15 = vadd.f32 %v3954_v21, %v1357_v58  ;;  %v3955_v26 = vld [vmem:[#allocation17_spill] sm:$0xff]  ;;  %v3956_v58 = vld [vmem:[#allocation35_spill] sm:$0xff] }
 0x19c   : > { %v1109_v41 = vsel %vm1095_vm3, %v1085_v29, 0.0  ;;  %v1070_v33 = vsel %vm1062_vm2, %v1037_v25, %v1053_v56  ;;  %v1071_v32 = vsel %vm1062_vm2, %v1038_v47, %v1054_v31  ;;  %v1086_v9 = vsel %vm1062_vm2, %v1053_v56, %v1037_v25 }
 0x19d   : > { %v1087_v12 = vsel %vm1062_vm2, %v1054_v31, %v1038_v47  ;;  %v1111_v7 = vsel %vm1095_vm3, %v1086_v9, 0.0  ;;  %v1316_v5 = vadd.f32 %v1284_v2, %v1109_v41  ;;  %v1319_v28 = vadd.f32 %v3577_v44, %v1070_v33  ;;  %v2047_v33 = vld [vmem:[%s3881_s6] ss:$0 sm:$0xff] }
 0x19e   : > { %v1113_v48 = vsel %vm1095_vm3, %v1087_v12, 0.0  ;;  %v1318_v3 = vadd.f32 %v1286_v55, %v1111_v7  ;;  %v1321_v13 = vadd.f32 %v3580_v24, %v1071_v32  ;;  %v1491_v56 = vadd.f32 %v1459_v23, %v3496_v6 }
 0x19f   : > { %v1320_v11 = vadd.f32 %v1288_v8, %v1113_v48  ;;  %v1493_v20 = vadd.f32 %v3955_v26, %v1424_v38  ;;  %v1495_v35 = vadd.f32 %v3956_v58, %v1426_v15  ;;  %v892_v31 = vmul.f32 %v3311_v36, %v3288_v59 }
 0x1a0   : > { %v894_v57 = vmul.f32 %v3311_v36, %v3646_v0  ;;  %v1517_v30 = vrot.slane %v1491_v56, 1  ;;  %v994_v44 = vmul.f32 %v3391_v27, %v3646_v0  ;;  %v1162_v2 = vmul.f32 %v3436_v62, %v3270_v14 }
 0x1a1   : > { %v1164_v6 = vmul.f32 %v3436_v62, %v3288_v59  ;;  %v1518_v24 = vrot.slane %v1493_v20, 1  ;;  %v1519_v23 = vrot.slane %v1495_v35, 1  ;;  %v924_v55 = vadd.f32 %v892_v31, %v823_v63 }
 0x1a2   : > { %v926_v8 = vadd.f32 %v894_v57, %v825_v18  ;;  %v1550_v25 = vsel %vm1543_vm4, %v1517_v30, %v1533_v19  ;;  %v1566_v36 = vsel %vm1543_vm4, %v1533_v19, %v1517_v30  ;;  %v1199_v27 = vmul.f32 %v3334_v54, %v3288_v59 }
 0x1a3   : > { %v1201_v62 = vmul.f32 %v3334_v54, %v3646_v0  ;;  %v1551_v63 = vsel %vm1543_vm4, %v1518_v24, %v1534_v16  ;;  %v3957_v18 = vrot.slane %v3602_v10, 1  ;;  %v1567_v60 = vsel %vm1543_vm4, %v1534_v16, %v1518_v24 }
 0x1a4   : > { %v1591_v17 = vsel %vm1577_vm5, %v1566_v36, 0.0  ;;  %v1593_v29 = vsel %vm1577_vm5, %v1567_v60, 0.0  ;;  %v1622_v38 = vadd.f32 %v1550_v25, %v1316_v5  ;;  %v1624_v21 = vadd.f32 %v1551_v63, %v1318_v3 }
 0x1a5   : > { %v1552_v47 = vsel %vm1543_vm4, %v1519_v23, %v3957_v18  ;;  %v3958_v19 = vmov %v3957_v18  ;;  %v1623_v40 = vadd.f32 %v1591_v17, %v1317_v4  ;;  %v1625_v15 = vadd.f32 %v1593_v29, %v1319_v28 }
 0x1a6   : > { %v1568_v54 = vsel %vm1543_vm4, %v3958_v19, %v1519_v23  ;;  %v1626_v16 = vadd.f32 %v1552_v47, %v1320_v11  ;;  %v1661_v32 = vadd.f32 %v2047_v33, %v1622_v38  ;;  %v1026_v9 = vadd.f32 %v994_v44, %v924_v55 }
 0x1a7   : > { %v1595_v41 = vsel %vm1577_vm5, %v1568_v54, 0.0  ;;  %v1028_v12 = vadd.f32 %v3596_v45, %v926_v8  ;;  %v1662_v7 = vadd.f32 %v2047_v33, %v1623_v40  ;;  %v1663_v48 = vadd.f32 %v2047_v33, %v1624_v21 }
 0x1a8   : > { %v1627_v10 = vadd.f32 %v1595_v41, %v1321_v13  ;;  %v1664_v4 = vadd.f32 %v2047_v33, %v1625_v15  ;;  %v1665_v5 = vadd.f32 %v2047_v33, %v1626_v16  ;;  %1693 = vst [vmem:[%s2688_s14 + $0x60] sm:$0xff] %v1661_v32  ;;  %v1044_v3 = vrot.slane %v1026_v9, 7 }
 0x1a9   : > { %v1045_v11 = vrot.slane %v1028_v12, 7  ;;  %v1231_v13 = vadd.f32 %v1199_v27, %v1162_v2  ;;  %1694 = vst [vmem:[%s2688_s14 + $0x68] sm:$0xff] %v1662_v7  ;;  %1695 = vst [vmem:[%s2688_s14 + $0x70] sm:$0xff] %v1663_v48  ;;  %v1233_v56 = vadd.f32 %v1201_v62, %v1164_v6  ;;  %v1268_v26 = vmul.f32 %v3403_v52, %v3646_v0 }
 0x1aa   : > { %v1666_v28 = vadd.f32 %v2047_v33, %v1627_v10  ;;  %1696 = vst [vmem:[%s2688_s14 + $0x78] sm:$0xff] %v1664_v4  ;;  %1697 = vst [vmem:[%s2688_s14 + $0x80] sm:$0xff] %v1665_v5  ;;  %v1369_v45 = vmul.f32 %v3325_v50, %v3270_v14  ;;  %v1371_v20 = vmul.f32 %v3325_v50, %v3288_v59  ;;  %v3959_v58 = vrot.slane %v3613_v34, 7 }
 0x1ab   : > { %v3960_v31 = vrot.slane %v3617_v42, 7  ;;  %v1300_v6 = vadd.f32 %v1268_v26, %v1231_v13  ;;  %v1302_v24 = vadd.f32 %v3620_v1, %v1233_v56  ;;  %v1406_v55 = vmul.f32 %v3353_v61, %v3288_v59 }
 0x1ac   : > { %1698 = vst [vmem:[%s2688_s14 + $0x88] sm:$0xff] %v1666_v28  ;;  %v1077_v35 = vsel %vm1062_vm2, %v1044_v3, %v3959_v58  ;;  %v3961_v30 = vmov %v3959_v58  ;;  %v1408_v42 = vmul.f32 %v3353_v61, %v3646_v0  ;;  %v1475_v36 = vmul.f32 %v3371_v49, %v3646_v0 }
 0x1ad   : > { %v1078_v57 = vsel %vm1062_vm2, %v1045_v11, %v3960_v31  ;;  %v1093_v52 = vsel %vm1062_vm2, %v3961_v30, %v1044_v3  ;;  %v3962_v14 = vmov %v3960_v31  ;;  %v1333_v23 = vadd.f32 %v3629_v22, %v1077_v35 }
 0x1ae   : > { %v1094_v50 = vsel %vm1062_vm2, %v3962_v14, %v1045_v11  ;;  %v1125_v44 = vsel %vm1095_vm3, %v1093_v52, 0.0  ;;  %v1335_v34 = vadd.f32 %v3639_v39, %v1078_v57  ;;  %v1438_v27 = vadd.f32 %v1406_v55, %v1369_v45 }
 0x1af   : > { %v1127_v2 = vsel %vm1095_vm3, %v1094_v50, 0.0  ;;  %v1332_v8 = vadd.f32 %v1300_v6, %v1125_v44  ;;  %v1440_v62 = vadd.f32 %v1408_v42, %v1371_v20  ;;  %v1541_v1 = vrot.slane %v3648_v46, 1 }
 0x1b0   : > { %v1334_v25 = vadd.f32 %v1302_v24, %v1127_v2  ;;  %v1542_v22 = vrot.slane %v3664_v53, 1  ;;  %v1507_v39 = vadd.f32 %v1475_v36, %v1438_v27 }
 0x1b1   : > { %v1509_v63 = vadd.f32 %v3642_v43, %v1440_v62 }
 0x1b2   : > { %v1525_v59 = vrot.slane %v1507_v39, 1 }
 0x1b3   : > { %v1526_v18 = vrot.slane %v1509_v63, 1 }
 0x1b4   : > { %v1558_v61 = vsel %vm1543_vm4, %v1525_v59, %v1541_v1  ;;  %v1574_v49 = vsel %vm1543_vm4, %v1541_v1, %v1525_v59 }
 0x1b5   : > { %v1559_v47 = vsel %vm1543_vm4, %v1526_v18, %v1542_v22  ;;  %v1575_v0 = vsel %vm1543_vm4, %v1542_v22, %v1526_v18  ;;  %v1607_v43 = vsel %vm1577_vm5, %v1574_v49, 0.0  ;;  %v1638_v53 = vadd.f32 %v1558_v61, %v1332_v8 }
 0x1b6   : > { %v1609_v46 = vsel %vm1577_vm5, %v1575_v0, 0.0  ;;  %v1640_v60 = vadd.f32 %v1559_v47, %v1334_v25  ;;  %v1639_v19 = vadd.f32 %v1607_v43, %v1333_v23 }
 0x1b7   : > { %v1641_v54 = vadd.f32 %v1609_v46, %v1335_v34  ;;  %v1677_v37 = vadd.f32 %v2047_v33, %v1638_v53 }
 0x1b8   : > { %v1679_v17 = vadd.f32 %v2047_v33, %v1640_v60  ;;  %v1678_v51 = vadd.f32 %v2047_v33, %v1639_v19 }
 0x1b9   : > { %v1680_v29 = vadd.f32 %v2047_v33, %v1641_v54  ;;  %1709 = vst [vmem:[%s2688_s14 + $0xe0] sm:$0xff] %v1677_v37 }
 0x1ba   : > { %1711 = vst [vmem:[%s2688_s14 + $0xf0] sm:$0xff] %v1679_v17  ;;  %1710 = vst [vmem:[%s2688_s14 + $0xe8] sm:$0xff] %v1678_v51 }
 0x1bb   : > { %1712 = vst [vmem:[%s2688_s14 + $0xf8] sm:$0xff] %v1680_v29 }
 0x1bc   : > { %2061 = shalt.err (!%p2058_p5)
}
 0x1bd   : > { %s2062_s29 = scalar_lea.hbm %s3819_s25, 4096  ;;  %s2066_s21 = scalar_lea.hbm %s3882_s7, 8192 }
 0x1be   : > { %p2063_p6 = scmp.ne.s32.totalorder %s3819_s25, %s2062_s29  ;;  %p2067_p10 = scmp.lt.u32.totalorder %s3819_s25, %s3882_s7 }
 0x1bf   : > { %p2068_p11 = scmp.lt.u32.totalorder %s2066_s21, %s2062_s29  ;;  %p2070_p13 = scmp.lt.u32.totalorder %s2062_s29, %s3819_s25 }
 0x1c0   : > { %p2064_p7 = pnand %p2063_p6, %p2211_p4 }
 0x1c1   : > { %p2069_p12 = por %p2068_p11, %p2067_p10 }
 0x1c2   : > { %p2065_p9 = pneg %p2064_p7 }
 0x1c3   : > { %p2071_p0 = por %p2070_p13, %p2069_p12 }
 0x1c5   : > { %p2072_p1 = pnand %p2071_p0, %p2065_p9 }
 0x1c7   : > { %2075 = shalt.err (!%p2072_p1)
}
 0x1c8   : > { %s2129_s28 = smov 128   ;;  %s2130_s10 = smov 8  }
 0x1c9   : > { %1980 = dma.vmem_to_hbm [thread:$0]  (%p2211_p4), %s3821_s8, 4096, %s3819_s25, %s3829_s15, %s2129_s28, %s2129_s28, %s2130_s10  }
 0x1ca PF: > { %p1986_p2 = scmp.ge.s32.totalorder %s2126_s27, 2  ;;  %s1745_s13 = sand.u32 1, %s2106_s1  }
 0x1cb   : > { %s1746_s16 = scalar_lea.sflag [#allocation4], %s1745_s13 }
 0x1cc   : > { %p1983_p3 = pnand %p1986_p2, %p2218_p8 }
 0x1ce   : > { %2101 = dma.done.wait (!%p1983_p3), %s1746_s16, 4096  }
 0x1cf   : > { %2103 = vsyncadd (!%p1983_p3), %s1746_s16, 4294963200  ;;  %s20_s27 = sadd.s32 1, %s2126_s27   ;;  %s3963_s1 = smov %s2110_s2 }
 0x1d0   : > { %p17_p5 = scmp.ge.s32.totalorder %s20_s27, 4   ;;  %s3964_s2 = smov %s2114_s24 }
 0x1d1   : > { %s3965_s24 = smov %s2224_s12  ;;  %s3966_s25 = smov %s2122_s26 }
 0x1d2   : > { %s3967_s26 = smov %s3969_s30  ;;  %19 = sbr.rel (!%p17_p5) target bundleno = 4 (0x4), region = 92 }
 0x1d9   :  { %1751 = vsyncpa [#allocation4], 1 }
 0x1da   :  { %1753 = vsyncpa [#allocation4 + $0x1], 1 }

</bundles_post_ra>
